<compile_context>
chip_gen: v6e
topology: v6e:2x2x1
jax: 0.10.0
libtpu: 0.0.40
codegen_flags: <defaults>
</compile_context>

<pallas_src>
import functools
import math

import jax
import jax.numpy as jnp
import numpy as np
from jax import lax
from jax.experimental import pallas as pl
from jax.experimental.pallas import tpu as pltpu


def _encoder_block_kernel(valid_lens_ref,                      # SMEM (B,) int32 (scalar prefetch)
                          xq_ref,                              # (1, TQ, D)  query rows
                          xkv_ref,                             # (1, S,  D)  full sequence (K/V side)
                          wq_t_ref, wk_t_ref, wv_t_ref, wo_t_ref,   # (D, D) each
                          g1_ref, beta1_ref,                   # (1, D)
                          w1_t_ref, b1_ref,                    # (D, F), (1, F)
                          w2_t_ref, b2_ref,                    # (F, D), (1, D)
                          g2_ref, beta2_ref,                   # (1, D)
                          out_ref,                             # (1, TQ, D)
                          q_scr, k_scr, v_scr, ctx_scr,        # VMEM scratch
                          *, num_heads, eps):
    b = pl.program_id(0)
    xq = xq_ref[0]                              # (TQ, D)
    xkv = xkv_ref[0]                            # (S, D)
    TQ, D = xq.shape
    S = xkv.shape[0]
    hd = D // num_heads
    scale = 1.0 / math.sqrt(hd)

    # ---- projections (no bias); fold 1/sqrt(hd) into Q once ----
    q_scr[...] = jnp.dot(xq, wq_t_ref[...], preferred_element_type=jnp.float32) * scale
    k_scr[...] = jnp.dot(xkv, wk_t_ref[...], preferred_element_type=jnp.float32)
    v_scr[...] = jnp.dot(xkv, wv_t_ref[...], preferred_element_type=jnp.float32)

    # ---- additive key mask, built once and shared by all heads ----
    vl = valid_lens_ref[b]                      # scalar valid length for this batch row
    kidx = lax.broadcasted_iota(jnp.int32, (TQ, S), 1)
    bias = jnp.where(kidx < vl, 0.0, -1e6)      # keys >= valid_len masked out

    # ---- per-head attention; contexts concatenated into ctx_scr ----
    for h in range(num_heads):                  # static unroll; ref slices bound live ranges
        sl = slice(h * hd, (h + 1) * hd)
        qh = q_scr[:, sl]                       # (TQ, hd)
        kh = k_scr[:, sl]                       # (S, hd)
        vh = v_scr[:, sl]                       # (S, hd)
        s = lax.dot_general(qh, kh, (((1,), (1,)), ((), ())),
                            preferred_element_type=jnp.float32)      # q @ k^T, (TQ, S)
        s = s + bias
        m = jnp.max(s, axis=-1, keepdims=True)
        e = jnp.exp(s - m)
        denom = jnp.sum(e, axis=-1, keepdims=True)
        p = e * pl.reciprocal(denom, approx=False)                   # exact: 1e-4 tolerance
        ctx_scr[:, sl] = jnp.dot(p, vh, preferred_element_type=jnp.float32)

    # ---- single full-K output projection: (TQ,D) @ (D,D) ----
    attn_out = jnp.dot(ctx_scr[...], wo_t_ref[...], preferred_element_type=jnp.float32)

    # ---- AddNorm1: LayerNorm(dropout(attn) + x), dropout == identity ----
    y = attn_out + xq
    mu = jnp.mean(y, axis=-1, keepdims=True)
    ms = jnp.mean(y * y, axis=-1, keepdims=True)
    inv = lax.rsqrt(ms - mu * mu + eps)                              # single-pass variance
    y = (y - mu) * inv * g1_ref[...] + beta1_ref[...]

    # ---- PositionWiseFFN ----
    h1 = jnp.dot(y, w1_t_ref[...], preferred_element_type=jnp.float32) + b1_ref[...]
    h1 = jnp.maximum(h1, 0.0)
    f = jnp.dot(h1, w2_t_ref[...], preferred_element_type=jnp.float32) + b2_ref[...]

    # ---- AddNorm2 ----
    z = f + y
    mu2 = jnp.mean(z, axis=-1, keepdims=True)
    ms2 = jnp.mean(z * z, axis=-1, keepdims=True)
    inv2 = lax.rsqrt(ms2 - mu2 * mu2 + eps)
    out_ref[0] = (z - mu2) * inv2 * g2_ref[...] + beta2_ref[...]


def _query_tile(seq_len):
    """Largest of {512,256,128} that divides S, else the full sequence."""
    for cand in (512, 256, 128):
        if seq_len % cand == 0:
            return cand
    return seq_len


def prepare_params(params):
    """Convert PyTorch-layout params to the kernel's canonical layout ONCE."""
    (wq, wk, wv, wo, g1, beta1, w1, b1, w2, b2, g2, beta2) = params
    D = wq.shape[0]
    F = w1.shape[0]
    return (wq.T, wk.T, wv.T, wo.T,
            g1.reshape(1, D), beta1.reshape(1, D),
            w1.T, b1.reshape(1, F),
            w2.T, b2.reshape(1, D),
            g2.reshape(1, D), beta2.reshape(1, D))


def _build_pallas_fn(B, S, D, F, TQ, num_heads, eps, single_buffer_weights):
    # Constant-index weights/biases: single-buffer them (double-buffering buys
    # nothing when the index_map never changes) to halve their VMEM footprint.
    wkw = dict(pipeline_mode=pl.Buffered(1)) if single_buffer_weights else {}

    qmap = lambda b, qt, vl: (b, qt, 0)       # query-row tile of x / out
    kvmap = lambda b, qt, vl: (b, 0, 0)       # full sequence of x for K/V
    cmap = lambda b, qt, vl: (0, 0)           # constant weight/bias blocks

    kernel = functools.partial(_encoder_block_kernel, num_heads=num_heads, eps=eps)

    return pl.pallas_call(
        kernel,
        out_shape=jax.ShapeDtypeStruct((B, S, D), jnp.float32),
        grid_spec=pltpu.PrefetchScalarGridSpec(
            num_scalar_prefetch=1,                       # valid_lens -> SMEM
            grid=(B, S // TQ),
            in_specs=[
                pl.BlockSpec((1, TQ, D), qmap),          # x (query rows)
                pl.BlockSpec((1, S, D), kvmap),          # x (key/value rows)
                pl.BlockSpec((D, D), cmap, **wkw),       # W_q^T
                pl.BlockSpec((D, D), cmap, **wkw),       # W_k^T
                pl.BlockSpec((D, D), cmap, **wkw),       # W_v^T
                pl.BlockSpec((D, D), cmap, **wkw),       # W_o^T
                pl.BlockSpec((1, D), cmap, **wkw),       # LN1 gamma
                pl.BlockSpec((1, D), cmap, **wkw),       # LN1 beta
                pl.BlockSpec((D, F), cmap, **wkw),       # FFN W1^T
                pl.BlockSpec((1, F), cmap, **wkw),       # FFN b1
                pl.BlockSpec((F, D), cmap, **wkw),       # FFN W2^T
                pl.BlockSpec((1, D), cmap, **wkw),       # FFN b2
                pl.BlockSpec((1, D), cmap, **wkw),       # LN2 gamma
                pl.BlockSpec((1, D), cmap, **wkw),       # LN2 beta
            ],
            out_specs=pl.BlockSpec((1, TQ, D), qmap),
            scratch_shapes=[
                pltpu.VMEM((TQ, D), jnp.float32),        # q (scaled)
                pltpu.VMEM((S, D), jnp.float32),         # k
                pltpu.VMEM((S, D), jnp.float32),         # v
                pltpu.VMEM((TQ, D), jnp.float32),        # concatenated per-head ctx
            ],
        ),
        compiler_params=pltpu.CompilerParams(
            dimension_semantics=("parallel", "parallel"),   # batch x query-tile, both independent
            vmem_limit_bytes=48 * 1024 * 1024,              # safe on v5e/v6e (128 MiB) and v7x (64 MiB)
        ),
    )


def encoder_block_forward(x, valid_lens, prep_params, num_heads, eps=1e-5):
    """x: (B, S, D) f32, valid_lens: (B,) int, prep_params from prepare_params()."""
    B, S, D = x.shape
    F = prep_params[6].shape[1]          # W1^T is (D, F)
    assert D % num_heads == 0
    TQ = _query_tile(S)
    assert S % TQ == 0

    args = (valid_lens.astype(jnp.int32), x, x) + tuple(prep_params)
    try:
        fn = _build_pallas_fn(B, S, D, F, TQ, num_heads, eps, single_buffer_weights=True)
        return fn(*args)
    except Exception:
        # Portability fallback: if this jax/libtpu build rejects
        # pipeline_mode=pl.Buffered(1), use default (double-buffered) weights.
        fn = _build_pallas_fn(B, S, D, F, TQ, num_heads, eps, single_buffer_weights=False)
        return fn(*args)


def _reference_forward(x, valid_lens, params, num_heads, eps=1e-5):
    """Pure-JAX reference mirroring the PyTorch EncoderBlock (eval mode)."""
    (wq, wk, wv, wo, g1, beta1, w1, b1, w2, b2, g2, beta2) = params
    B, S, D = x.shape
    H = num_heads
    hd = D // H
    hp = lax.Precision.HIGHEST

    def mm(a, b_):
        return jnp.matmul(a, b_, precision=hp)

    q, k, v = mm(x, wq.T), mm(x, wk.T), mm(x, wv.T)

    def split_heads(t):                          # transpose_qkv
        return t.reshape(B, S, H, hd).transpose(0, 2, 1, 3).reshape(B * H, S, hd)

    qh, kh, vh = split_heads(q), split_heads(k), split_heads(v)
    scores = jnp.einsum('bqd,bkd->bqk', qh, kh, precision=hp) / math.sqrt(hd)
    vl = jnp.repeat(valid_lens, H)               # repeat_interleave over heads
    mask = jnp.arange(S)[None, None, :] < vl[:, None, None]
    scores = jnp.where(mask, scores, -1e6)
    attn = jax.nn.softmax(scores, axis=-1)
    ctx = jnp.einsum('bqk,bkd->bqd', attn, vh, precision=hp)
    ctx = ctx.reshape(B, H, S, hd).transpose(0, 2, 1, 3).reshape(B, S, D)  # transpose_output
    attn_out = mm(ctx, wo.T)

    def ln(t, g, bta):
        mu = t.mean(-1, keepdims=True)
        var = ((t - mu) ** 2).mean(-1, keepdims=True)
        return (t - mu) / jnp.sqrt(var + eps) * g + bta

    y = ln(x + attn_out, g1, beta1)
    h1 = jax.nn.relu(mm(y, w1.T) + b1)
    f = mm(h1, w2.T) + b2
    return ln(y + f, g2, beta2)


if __name__ == "__main__":
    batch, seq, num_hiddens, num_heads, ffn_hidden = 2, 8, 32, 4, 64

    key = jax.random.PRNGKey(0)
    ks = jax.random.split(key, 13)

    def lin_w(k, out_f, in_f):
        bound = 1.0 / math.sqrt(in_f)
        return jax.random.uniform(k, (out_f, in_f), jnp.float32, -bound, bound)

    wq = lin_w(ks[0], num_hiddens, num_hiddens)
    wk = lin_w(ks[1], num_hiddens, num_hiddens)
    wv = lin_w(ks[2], num_hiddens, num_hiddens)
    wo = lin_w(ks[3], num_hiddens, num_hiddens)
    g1 = (1.0 + 0.1 * jax.random.normal(ks[4], (num_hiddens,))).astype(jnp.float32)
    beta1 = (0.1 * jax.random.normal(ks[5], (num_hiddens,))).astype(jnp.float32)
    w1 = lin_w(ks[6], ffn_hidden, num_hiddens)
    b1 = jax.random.uniform(ks[7], (ffn_hidden,), jnp.float32,
                            -1.0 / math.sqrt(num_hiddens), 1.0 / math.sqrt(num_hiddens))
    w2 = lin_w(ks[8], num_hiddens, ffn_hidden)
    b2 = jax.random.uniform(ks[9], (num_hiddens,), jnp.float32,
                            -1.0 / math.sqrt(ffn_hidden), 1.0 / math.sqrt(ffn_hidden))
    g2 = (1.0 + 0.1 * jax.random.normal(ks[10], (num_hiddens,))).astype(jnp.float32)
    beta2 = (0.1 * jax.random.normal(ks[11], (num_hiddens,))).astype(jnp.float32)
    params = (wq, wk, wv, wo, g1, beta1, w1, b1, w2, b2, g2, beta2)

    x = jax.random.normal(ks[12], (batch, seq, num_hiddens), dtype=jnp.float32)
    valid_lens = jnp.array([3, 8], dtype=jnp.int32)   # one partial, one full

    prep = prepare_params(params)                      # canonical kernel layout, done once
    out = encoder_block_forward(x, valid_lens, prep, num_heads)
    out = jax.block_until_ready(out)

    ref = _reference_forward(x, valid_lens, params, num_heads)
    assert out.shape == (batch, seq, num_hiddens)
    np.testing.assert_allclose(np.asarray(out), np.asarray(ref), rtol=1e-4, atol=1e-4)
    print("KERNEL_OK")
</pallas_src>

<mosaic_0001>
module attributes {stable_mosaic.version = 11 : i64} {
  func.func @_encoder_block_kernel(%arg0: i32, %arg1: i32, %arg2: memref<2xi32, #tpu.memory_space<smem>>, %arg3: memref<1x8x32xf32, #tpu.memory_space<vmem>>, %arg4: memref<1x8x32xf32, #tpu.memory_space<vmem>>, %arg5: memref<32x32xf32, #tpu.memory_space<vmem>>, %arg6: memref<32x32xf32, #tpu.memory_space<vmem>>, %arg7: memref<32x32xf32, #tpu.memory_space<vmem>>, %arg8: memref<32x32xf32, #tpu.memory_space<vmem>>, %arg9: memref<1x32xf32, #tpu.memory_space<vmem>>, %arg10: memref<1x32xf32, #tpu.memory_space<vmem>>, %arg11: memref<32x64xf32, #tpu.memory_space<vmem>>, %arg12: memref<1x64xf32, #tpu.memory_space<vmem>>, %arg13: memref<64x32xf32, #tpu.memory_space<vmem>>, %arg14: memref<1x32xf32, #tpu.memory_space<vmem>>, %arg15: memref<1x32xf32, #tpu.memory_space<vmem>>, %arg16: memref<1x32xf32, #tpu.memory_space<vmem>>, %arg17: memref<1x8x32xf32, #tpu.memory_space<vmem>>, %arg18: memref<8x32xf32, #tpu.memory_space<vmem>>, %arg19: memref<8x32xf32, #tpu.memory_space<vmem>>, %arg20: memref<8x32xf32, #tpu.memory_space<vmem>>, %arg21: memref<8x32xf32, #tpu.memory_space<vmem>>) attributes {dimension_semantics = [#tpu.dimension_semantics<parallel>, #tpu.dimension_semantics<parallel>], iteration_bounds = array<i64: 2, 1>, scalar_prefetch = 1 : i64, scratch_operands = 4 : i64, tpu.core_type = #tpu.core_type<tc>, window_params = [{transform_indices = @transform_0, window_bounds = array<i64: 1, 8, 32>}, {transform_indices = @transform_1, window_bounds = array<i64: 1, 8, 32>}, {pipeline_mode = #tpu.pipeline_mode<synchronous>, transform_indices = @transform_2, window_bounds = array<i64: 32, 32>}, {pipeline_mode = #tpu.pipeline_mode<synchronous>, transform_indices = @transform_3, window_bounds = array<i64: 32, 32>}, {pipeline_mode = #tpu.pipeline_mode<synchronous>, transform_indices = @transform_4, window_bounds = array<i64: 32, 32>}, {pipeline_mode = #tpu.pipeline_mode<synchronous>, transform_indices = @transform_5, window_bounds = array<i64: 32, 32>}, {pipeline_mode = #tpu.pipeline_mode<synchronous>, transform_indices = @transform_6, window_bounds = array<i64: 1, 32>}, {pipeline_mode = #tpu.pipeline_mode<synchronous>, transform_indices = @transform_7, window_bounds = array<i64: 1, 32>}, {pipeline_mode = #tpu.pipeline_mode<synchronous>, transform_indices = @transform_8, window_bounds = array<i64: 32, 64>}, {pipeline_mode = #tpu.pipeline_mode<synchronous>, transform_indices = @transform_9, window_bounds = array<i64: 1, 64>}, {pipeline_mode = #tpu.pipeline_mode<synchronous>, transform_indices = @transform_10, window_bounds = array<i64: 64, 32>}, {pipeline_mode = #tpu.pipeline_mode<synchronous>, transform_indices = @transform_11, window_bounds = array<i64: 1, 32>}, {pipeline_mode = #tpu.pipeline_mode<synchronous>, transform_indices = @transform_12, window_bounds = array<i64: 1, 32>}, {pipeline_mode = #tpu.pipeline_mode<synchronous>, transform_indices = @transform_13, window_bounds = array<i64: 1, 32>}, {transform_indices = @transform_14, window_bounds = array<i64: 1, 8, 32>}]} {
    %c0 = arith.constant 0 : index
    %c0_0 = arith.constant 0 : index
    %c0_1 = arith.constant 0 : index
    %0 = vector.load %arg3[%c0, %c0_0, %c0_1] : memref<1x8x32xf32, #tpu.memory_space<vmem>>, vector<1x8x32xf32>
    %1 = vector.shape_cast %0 : vector<1x8x32xf32> to vector<8x32xf32>
    %c0_2 = arith.constant 0 : index
    %c0_3 = arith.constant 0 : index
    %c0_4 = arith.constant 0 : index
    %2 = vector.load %arg4[%c0_2, %c0_3, %c0_4] : memref<1x8x32xf32, #tpu.memory_space<vmem>>, vector<1x8x32xf32>
    %3 = vector.shape_cast %2 : vector<1x8x32xf32> to vector<8x32xf32>
    %c0_5 = arith.constant 0 : index
    %c0_6 = arith.constant 0 : index
    %4 = vector.load %arg5[%c0_5, %c0_6] : memref<32x32xf32, #tpu.memory_space<vmem>>, vector<32x32xf32>
    %cst = arith.constant dense<0.000000e+00> : vector<8x32xf32>
    %5 = tpu.matmul %1, %4, %cst {dimension_numbers = #tpu.dot_dimension_numbers<[1], [0], [0], [1], [0, 0, 1, 1], [], []>} : vector<8x32xf32>, vector<32x32xf32>, vector<8x32xf32> -> vector<8x32xf32>
    %cst_7 = arith.constant 0.353553385 : f32
    %6 = vector.broadcast %cst_7 : f32 to vector<8x32xf32>
    %7 = arith.mulf %5, %6 : vector<8x32xf32>
    %c0_8 = arith.constant 0 : index
    %c0_9 = arith.constant 0 : index
    %8 = vector.load %arg18[%c0_8, %c0_9] : memref<8x32xf32, #tpu.memory_space<vmem>>, vector<8x32xf32>
    tpu.vector_store %arg18[%c0_8, %c0_9], %7 {strides = array<i32>} : memref<8x32xf32, #tpu.memory_space<vmem>>, vector<8x32xf32>,
    %c0_10 = arith.constant 0 : index
    %c0_11 = arith.constant 0 : index
    %9 = vector.load %arg6[%c0_10, %c0_11] : memref<32x32xf32, #tpu.memory_space<vmem>>, vector<32x32xf32>
    %cst_12 = arith.constant dense<0.000000e+00> : vector<8x32xf32>
    %10 = tpu.matmul %3, %9, %cst_12 {dimension_numbers = #tpu.dot_dimension_numbers<[1], [0], [0], [1], [0, 0, 1, 1], [], []>} : vector<8x32xf32>, vector<32x32xf32>, vector<8x32xf32> -> vector<8x32xf32>
    %c0_13 = arith.constant 0 : index
    %c0_14 = arith.constant 0 : index
    %11 = vector.load %arg19[%c0_13, %c0_14] : memref<8x32xf32, #tpu.memory_space<vmem>>, vector<8x32xf32>
    tpu.vector_store %arg19[%c0_13, %c0_14], %10 {strides = array<i32>} : memref<8x32xf32, #tpu.memory_space<vmem>>, vector<8x32xf32>,
    %c0_15 = arith.constant 0 : index
    %c0_16 = arith.constant 0 : index
    %12 = vector.load %arg7[%c0_15, %c0_16] : memref<32x32xf32, #tpu.memory_space<vmem>>, vector<32x32xf32>
    %cst_17 = arith.constant dense<0.000000e+00> : vector<8x32xf32>
    %13 = tpu.matmul %3, %12, %cst_17 {dimension_numbers = #tpu.dot_dimension_numbers<[1], [0], [0], [1], [0, 0, 1, 1], [], []>} : vector<8x32xf32>, vector<32x32xf32>, vector<8x32xf32> -> vector<8x32xf32>
    %c0_18 = arith.constant 0 : index
    %c0_19 = arith.constant 0 : index
    %14 = vector.load %arg20[%c0_18, %c0_19] : memref<8x32xf32, #tpu.memory_space<vmem>>, vector<8x32xf32>
    tpu.vector_store %arg20[%c0_18, %c0_19], %13 {strides = array<i32>} : memref<8x32xf32, #tpu.memory_space<vmem>>, vector<8x32xf32>,
    %15 = arith.index_cast %arg0 : i32 to index
    %16 = memref.load %arg2[%15] : memref<2xi32, #tpu.memory_space<smem>>
    %17 = tpu.iota {dimensions = array<i32: 1>} : vector<8x8xi32>
    %18 = vector.broadcast %16 : i32 to vector<8x8xi32>
    %19 = arith.cmpi slt, %17, %18 : vector<8x8xi32>
    %cst_20 = arith.constant 0.000000e+00 : f32
    %cst_21 = arith.constant -1.000000e+06 : f32
    %20 = vector.broadcast %cst_20 : f32 to vector<8x8xf32>
    %21 = vector.broadcast %cst_21 : f32 to vector<8x8xf32>
    %22 = arith.select %19, %20, %21 : vector<8x8xi1>, vector<8x8xf32>
    %c0_22 = arith.constant 0 : index
    %c0_23 = arith.constant 0 : index
    %23 = vector.load %arg18[%c0_22, %c0_23] : memref<8x32xf32, #tpu.memory_space<vmem>>, vector<8x8xf32>
    %c0_24 = arith.constant 0 : index
    %c0_25 = arith.constant 0 : index
    %24 = vector.load %arg19[%c0_24, %c0_25] : memref<8x32xf32, #tpu.memory_space<vmem>>, vector<8x8xf32>
    %c0_26 = arith.constant 0 : index
    %c0_27 = arith.constant 0 : index
    %25 = vector.load %arg20[%c0_26, %c0_27] : memref<8x32xf32, #tpu.memory_space<vmem>>, vector<8x8xf32>
    %cst_28 = arith.constant dense<0.000000e+00> : vector<8x8xf32>
    %26 = tpu.matmul %23, %24, %cst_28 {dimension_numbers = #tpu.dot_dimension_numbers<[1], [1], [0], [0], [0, 0, 1, 0], [], []>} : vector<8x8xf32>, vector<8x8xf32>, vector<8x8xf32> -> vector<8x8xf32>
    %27 = arith.addf %26, %22 : vector<8x8xf32>
    %cst_29 = arith.constant dense<0xFF800000> : vector<8xf32>
    %28 = vector.multi_reduction <maximumf>, %27, %cst_29 [1] : vector<8x8xf32> to vector<8xf32>
    %29 = vector.shape_cast %28 : vector<8xf32> to vector<8x1xf32>
    %30 = vector.broadcast %29 : vector<8x1xf32> to vector<8x8xf32>
    %31 = arith.subf %27, %30 : vector<8x8xf32>
    %32 = math.exp %31 : vector<8x8xf32>
    %cst_30 = arith.constant dense<0.000000e+00> : vector<8xf32>
    %33 = vector.multi_reduction <add>, %32, %cst_30 [1] : vector<8x8xf32> to vector<8xf32>
    %34 = vector.shape_cast %33 : vector<8xf32> to vector<8x1xf32>
    %35 = tpu.reciprocal %34 : vector<8x1xf32> -> vector<8x1xf32>
    %36 = vector.broadcast %35 : vector<8x1xf32> to vector<8x8xf32>
    %37 = arith.mulf %32, %36 : vector<8x8xf32>
    %cst_31 = arith.constant dense<0.000000e+00> : vector<8x8xf32>
    %38 = tpu.matmul %37, %25, %cst_31 {dimension_numbers = #tpu.dot_dimension_numbers<[1], [0], [0], [1], [0, 0, 1, 1], [], []>} : vector<8x8xf32>, vector<8x8xf32>, vector<8x8xf32> -> vector<8x8xf32>
    %c0_32 = arith.constant 0 : index
    %c0_33 = arith.constant 0 : index
    %39 = vector.load %arg21[%c0_32, %c0_33] : memref<8x32xf32, #tpu.memory_space<vmem>>, vector<8x8xf32>
    tpu.vector_store %arg21[%c0_32, %c0_33], %38 {strides = array<i32>} : memref<8x32xf32, #tpu.memory_space<vmem>>, vector<8x8xf32>,
    %c0_34 = arith.constant 0 : index
    %c8 = arith.constant 8 : index
    %40 = vector.load %arg18[%c0_34, %c8] : memref<8x32xf32, #tpu.memory_space<vmem>>, vector<8x8xf32>
    %c0_35 = arith.constant 0 : index
    %c8_36 = arith.constant 8 : index
    %41 = vector.load %arg19[%c0_35, %c8_36] : memref<8x32xf32, #tpu.memory_space<vmem>>, vector<8x8xf32>
    %c0_37 = arith.constant 0 : index
    %c8_38 = arith.constant 8 : index
    %42 = vector.load %arg20[%c0_37, %c8_38] : memref<8x32xf32, #tpu.memory_space<vmem>>, vector<8x8xf32>
    %cst_39 = arith.constant dense<0.000000e+00> : vector<8x8xf32>
    %43 = tpu.matmul %40, %41, %cst_39 {dimension_numbers = #tpu.dot_dimension_numbers<[1], [1], [0], [0], [0, 0, 1, 0], [], []>} : vector<8x8xf32>, vector<8x8xf32>, vector<8x8xf32> -> vector<8x8xf32>
    %44 = arith.addf %43, %22 : vector<8x8xf32>
    %cst_40 = arith.constant dense<0xFF800000> : vector<8xf32>
    %45 = vector.multi_reduction <maximumf>, %44, %cst_40 [1] : vector<8x8xf32> to vector<8xf32>
    %46 = vector.shape_cast %45 : vector<8xf32> to vector<8x1xf32>
    %47 = vector.broadcast %46 : vector<8x1xf32> to vector<8x8xf32>
    %48 = arith.subf %44, %47 : vector<8x8xf32>
    %49 = math.exp %48 : vector<8x8xf32>
    %cst_41 = arith.constant dense<0.000000e+00> : vector<8xf32>
    %50 = vector.multi_reduction <add>, %49, %cst_41 [1] : vector<8x8xf32> to vector<8xf32>
    %51 = vector.shape_cast %50 : vector<8xf32> to vector<8x1xf32>
    %52 = tpu.reciprocal %51 : vector<8x1xf32> -> vector<8x1xf32>
    %53 = vector.broadcast %52 : vector<8x1xf32> to vector<8x8xf32>
    %54 = arith.mulf %49, %53 : vector<8x8xf32>
    %cst_42 = arith.constant dense<0.000000e+00> : vector<8x8xf32>
    %55 = tpu.matmul %54, %42, %cst_42 {dimension_numbers = #tpu.dot_dimension_numbers<[1], [0], [0], [1], [0, 0, 1, 1], [], []>} : vector<8x8xf32>, vector<8x8xf32>, vector<8x8xf32> -> vector<8x8xf32>
    %c0_43 = arith.constant 0 : index
    %c8_44 = arith.constant 8 : index
    %56 = vector.load %arg21[%c0_43, %c8_44] : memref<8x32xf32, #tpu.memory_space<vmem>>, vector<8x8xf32>
    tpu.vector_store %arg21[%c0_43, %c8_44], %55 {strides = array<i32>} : memref<8x32xf32, #tpu.memory_space<vmem>>, vector<8x8xf32>,
    %c0_45 = arith.constant 0 : index
    %c16 = arith.constant 16 : index
    %57 = vector.load %arg18[%c0_45, %c16] : memref<8x32xf32, #tpu.memory_space<vmem>>, vector<8x8xf32>
    %c0_46 = arith.constant 0 : index
    %c16_47 = arith.constant 16 : index
    %58 = vector.load %arg19[%c0_46, %c16_47] : memref<8x32xf32, #tpu.memory_space<vmem>>, vector<8x8xf32>
    %c0_48 = arith.constant 0 : index
    %c16_49 = arith.constant 16 : index
    %59 = vector.load %arg20[%c0_48, %c16_49] : memref<8x32xf32, #tpu.memory_space<vmem>>, vector<8x8xf32>
    %cst_50 = arith.constant dense<0.000000e+00> : vector<8x8xf32>
    %60 = tpu.matmul %57, %58, %cst_50 {dimension_numbers = #tpu.dot_dimension_numbers<[1], [1], [0], [0], [0, 0, 1, 0], [], []>} : vector<8x8xf32>, vector<8x8xf32>, vector<8x8xf32> -> vector<8x8xf32>
    %61 = arith.addf %60, %22 : vector<8x8xf32>
    %cst_51 = arith.constant dense<0xFF800000> : vector<8xf32>
    %62 = vector.multi_reduction <maximumf>, %61, %cst_51 [1] : vector<8x8xf32> to vector<8xf32>
    %63 = vector.shape_cast %62 : vector<8xf32> to vector<8x1xf32>
    %64 = vector.broadcast %63 : vector<8x1xf32> to vector<8x8xf32>
    %65 = arith.subf %61, %64 : vector<8x8xf32>
    %66 = math.exp %65 : vector<8x8xf32>
    %cst_52 = arith.constant dense<0.000000e+00> : vector<8xf32>
    %67 = vector.multi_reduction <add>, %66, %cst_52 [1] : vector<8x8xf32> to vector<8xf32>
    %68 = vector.shape_cast %67 : vector<8xf32> to vector<8x1xf32>
    %69 = tpu.reciprocal %68 : vector<8x1xf32> -> vector<8x1xf32>
    %70 = vector.broadcast %69 : vector<8x1xf32> to vector<8x8xf32>
    %71 = arith.mulf %66, %70 : vector<8x8xf32>
    %cst_53 = arith.constant dense<0.000000e+00> : vector<8x8xf32>
    %72 = tpu.matmul %71, %59, %cst_53 {dimension_numbers = #tpu.dot_dimension_numbers<[1], [0], [0], [1], [0, 0, 1, 1], [], []>} : vector<8x8xf32>, vector<8x8xf32>, vector<8x8xf32> -> vector<8x8xf32>
    %c0_54 = arith.constant 0 : index
    %c16_55 = arith.constant 16 : index
    %73 = vector.load %arg21[%c0_54, %c16_55] : memref<8x32xf32, #tpu.memory_space<vmem>>, vector<8x8xf32>
    tpu.vector_store %arg21[%c0_54, %c16_55], %72 {strides = array<i32>} : memref<8x32xf32, #tpu.memory_space<vmem>>, vector<8x8xf32>,
    %c0_56 = arith.constant 0 : index
    %c24 = arith.constant 24 : index
    %74 = vector.load %arg18[%c0_56, %c24] : memref<8x32xf32, #tpu.memory_space<vmem>>, vector<8x8xf32>
    %c0_57 = arith.constant 0 : index
    %c24_58 = arith.constant 24 : index
    %75 = vector.load %arg19[%c0_57, %c24_58] : memref<8x32xf32, #tpu.memory_space<vmem>>, vector<8x8xf32>
    %c0_59 = arith.constant 0 : index
    %c24_60 = arith.constant 24 : index
    %76 = vector.load %arg20[%c0_59, %c24_60] : memref<8x32xf32, #tpu.memory_space<vmem>>, vector<8x8xf32>
    %cst_61 = arith.constant dense<0.000000e+00> : vector<8x8xf32>
    %77 = tpu.matmul %74, %75, %cst_61 {dimension_numbers = #tpu.dot_dimension_numbers<[1], [1], [0], [0], [0, 0, 1, 0], [], []>} : vector<8x8xf32>, vector<8x8xf32>, vector<8x8xf32> -> vector<8x8xf32>
    %78 = arith.addf %77, %22 : vector<8x8xf32>
    %cst_62 = arith.constant dense<0xFF800000> : vector<8xf32>
    %79 = vector.multi_reduction <maximumf>, %78, %cst_62 [1] : vector<8x8xf32> to vector<8xf32>
    %80 = vector.shape_cast %79 : vector<8xf32> to vector<8x1xf32>
    %81 = vector.broadcast %80 : vector<8x1xf32> to vector<8x8xf32>
    %82 = arith.subf %78, %81 : vector<8x8xf32>
    %83 = math.exp %82 : vector<8x8xf32>
    %cst_63 = arith.constant dense<0.000000e+00> : vector<8xf32>
    %84 = vector.multi_reduction <add>, %83, %cst_63 [1] : vector<8x8xf32> to vector<8xf32>
    %85 = vector.shape_cast %84 : vector<8xf32> to vector<8x1xf32>
    %86 = tpu.reciprocal %85 : vector<8x1xf32> -> vector<8x1xf32>
    %87 = vector.broadcast %86 : vector<8x1xf32> to vector<8x8xf32>
    %88 = arith.mulf %83, %87 : vector<8x8xf32>
    %cst_64 = arith.constant dense<0.000000e+00> : vector<8x8xf32>
    %89 = tpu.matmul %88, %76, %cst_64 {dimension_numbers = #tpu.dot_dimension_numbers<[1], [0], [0], [1], [0, 0, 1, 1], [], []>} : vector<8x8xf32>, vector<8x8xf32>, vector<8x8xf32> -> vector<8x8xf32>
    %c0_65 = arith.constant 0 : index
    %c24_66 = arith.constant 24 : index
    %90 = vector.load %arg21[%c0_65, %c24_66] : memref<8x32xf32, #tpu.memory_space<vmem>>, vector<8x8xf32>
    tpu.vector_store %arg21[%c0_65, %c24_66], %89 {strides = array<i32>} : memref<8x32xf32, #tpu.memory_space<vmem>>, vector<8x8xf32>,
    %c0_67 = arith.constant 0 : index
    %c0_68 = arith.constant 0 : index
    %91 = vector.load %arg21[%c0_67, %c0_68] : memref<8x32xf32, #tpu.memory_space<vmem>>, vector<8x32xf32>
    %c0_69 = arith.constant 0 : index
    %c0_70 = arith.constant 0 : index
    %92 = vector.load %arg8[%c0_69, %c0_70] : memref<32x32xf32, #tpu.memory_space<vmem>>, vector<32x32xf32>
    %cst_71 = arith.constant dense<0.000000e+00> : vector<8x32xf32>
    %93 = tpu.matmul %91, %92, %cst_71 {dimension_numbers = #tpu.dot_dimension_numbers<[1], [0], [0], [1], [0, 0, 1, 1], [], []>} : vector<8x32xf32>, vector<32x32xf32>, vector<8x32xf32> -> vector<8x32xf32>
    %94 = arith.addf %93, %1 : vector<8x32xf32>
    %cst_72 = arith.constant dense<0.000000e+00> : vector<8xf32>
    %95 = vector.multi_reduction <add>, %94, %cst_72 [1] : vector<8x32xf32> to vector<8xf32>
    %96 = vector.shape_cast %95 : vector<8xf32> to vector<8x1xf32>
    %cst_73 = arith.constant 3.200000e+01 : f32
    %97 = vector.broadcast %cst_73 : f32 to vector<8x1xf32>
    %98 = arith.divf %96, %97 : vector<8x1xf32>
    %99 = arith.mulf %94, %94 : vector<8x32xf32>
    %cst_74 = arith.constant dense<0.000000e+00> : vector<8xf32>
    %100 = vector.multi_reduction <add>, %99, %cst_74 [1] : vector<8x32xf32> to vector<8xf32>
    %101 = vector.shape_cast %100 : vector<8xf32> to vector<8x1xf32>
    %cst_75 = arith.constant 3.200000e+01 : f32
    %102 = vector.broadcast %cst_75 : f32 to vector<8x1xf32>
    %103 = arith.divf %101, %102 : vector<8x1xf32>
    %104 = arith.mulf %98, %98 : vector<8x1xf32>
    %105 = arith.subf %103, %104 : vector<8x1xf32>
    %cst_76 = arith.constant 9.99999974E-6 : f32
    %106 = vector.broadcast %cst_76 : f32 to vector<8x1xf32>
    %107 = arith.addf %105, %106 : vector<8x1xf32>
    %108 = math.rsqrt %107 : vector<8x1xf32>
    %109 = vector.broadcast %98 : vector<8x1xf32> to vector<8x32xf32>
    %110 = arith.subf %94, %109 : vector<8x32xf32>
    %111 = vector.broadcast %108 : vector<8x1xf32> to vector<8x32xf32>
    %112 = arith.mulf %110, %111 : vector<8x32xf32>
    %c0_77 = arith.constant 0 : index
    %c0_78 = arith.constant 0 : index
    %113 = vector.load %arg9[%c0_77, %c0_78] : memref<1x32xf32, #tpu.memory_space<vmem>>, vector<1x32xf32>
    %114 = vector.broadcast %113 : vector<1x32xf32> to vector<8x32xf32>
    %115 = arith.mulf %112, %114 : vector<8x32xf32>
    %c0_79 = arith.constant 0 : index
    %c0_80 = arith.constant 0 : index
    %116 = vector.load %arg10[%c0_79, %c0_80] : memref<1x32xf32, #tpu.memory_space<vmem>>, vector<1x32xf32>
    %117 = vector.broadcast %116 : vector<1x32xf32> to vector<8x32xf32>
    %118 = arith.addf %115, %117 : vector<8x32xf32>
    %c0_81 = arith.constant 0 : index
    %c0_82 = arith.constant 0 : index
    %119 = vector.load %arg11[%c0_81, %c0_82] : memref<32x64xf32, #tpu.memory_space<vmem>>, vector<32x64xf32>
    %cst_83 = arith.constant dense<0.000000e+00> : vector<8x64xf32>
    %120 = tpu.matmul %118, %119, %cst_83 {dimension_numbers = #tpu.dot_dimension_numbers<[1], [0], [0], [1], [0, 0, 1, 1], [], []>} : vector<8x32xf32>, vector<32x64xf32>, vector<8x64xf32> -> vector<8x64xf32>
    %c0_84 = arith.constant 0 : index
    %c0_85 = arith.constant 0 : index
    %121 = vector.load %arg12[%c0_84, %c0_85] : memref<1x64xf32, #tpu.memory_space<vmem>>, vector<1x64xf32>
    %122 = vector.broadcast %121 : vector<1x64xf32> to vector<8x64xf32>
    %123 = arith.addf %120, %122 : vector<8x64xf32>
    %cst_86 = arith.constant 0.000000e+00 : f32
    %124 = vector.broadcast %cst_86 : f32 to vector<8x64xf32>
    %125 = arith.maximumf %123, %124 : vector<8x64xf32>
    %c0_87 = arith.constant 0 : index
    %c0_88 = arith.constant 0 : index
    %126 = vector.load %arg13[%c0_87, %c0_88] : memref<64x32xf32, #tpu.memory_space<vmem>>, vector<64x32xf32>
    %cst_89 = arith.constant dense<0.000000e+00> : vector<8x32xf32>
    %127 = tpu.matmul %125, %126, %cst_89 {dimension_numbers = #tpu.dot_dimension_numbers<[1], [0], [0], [1], [0, 0, 1, 1], [], []>} : vector<8x64xf32>, vector<64x32xf32>, vector<8x32xf32> -> vector<8x32xf32>
    %c0_90 = arith.constant 0 : index
    %c0_91 = arith.constant 0 : index
    %128 = vector.load %arg14[%c0_90, %c0_91] : memref<1x32xf32, #tpu.memory_space<vmem>>, vector<1x32xf32>
    %129 = vector.broadcast %128 : vector<1x32xf32> to vector<8x32xf32>
    %130 = arith.addf %127, %129 : vector<8x32xf32>
    %131 = arith.addf %130, %118 : vector<8x32xf32>
    %cst_92 = arith.constant dense<0.000000e+00> : vector<8xf32>
    %132 = vector.multi_reduction <add>, %131, %cst_92 [1] : vector<8x32xf32> to vector<8xf32>
    %133 = vector.shape_cast %132 : vector<8xf32> to vector<8x1xf32>
    %cst_93 = arith.constant 3.200000e+01 : f32
    %134 = vector.broadcast %cst_93 : f32 to vector<8x1xf32>
    %135 = arith.divf %133, %134 : vector<8x1xf32>
    %136 = arith.mulf %131, %131 : vector<8x32xf32>
    %cst_94 = arith.constant dense<0.000000e+00> : vector<8xf32>
    %137 = vector.multi_reduction <add>, %136, %cst_94 [1] : vector<8x32xf32> to vector<8xf32>
    %138 = vector.shape_cast %137 : vector<8xf32> to vector<8x1xf32>
    %cst_95 = arith.constant 3.200000e+01 : f32
    %139 = vector.broadcast %cst_95 : f32 to vector<8x1xf32>
    %140 = arith.divf %138, %139 : vector<8x1xf32>
    %141 = arith.mulf %135, %135 : vector<8x1xf32>
    %142 = arith.subf %140, %141 : vector<8x1xf32>
    %cst_96 = arith.constant 9.99999974E-6 : f32
    %143 = vector.broadcast %cst_96 : f32 to vector<8x1xf32>
    %144 = arith.addf %142, %143 : vector<8x1xf32>
    %145 = math.rsqrt %144 : vector<8x1xf32>
    %146 = vector.broadcast %135 : vector<8x1xf32> to vector<8x32xf32>
    %147 = arith.subf %131, %146 : vector<8x32xf32>
    %148 = vector.broadcast %145 : vector<8x1xf32> to vector<8x32xf32>
    %149 = arith.mulf %147, %148 : vector<8x32xf32>
    %c0_97 = arith.constant 0 : index
    %c0_98 = arith.constant 0 : index
    %150 = vector.load %arg15[%c0_97, %c0_98] : memref<1x32xf32, #tpu.memory_space<vmem>>, vector<1x32xf32>
    %151 = vector.broadcast %150 : vector<1x32xf32> to vector<8x32xf32>
    %152 = arith.mulf %149, %151 : vector<8x32xf32>
    %c0_99 = arith.constant 0 : index
    %c0_100 = arith.constant 0 : index
    %153 = vector.load %arg16[%c0_99, %c0_100] : memref<1x32xf32, #tpu.memory_space<vmem>>, vector<1x32xf32>
    %154 = vector.broadcast %153 : vector<1x32xf32> to vector<8x32xf32>
    %155 = arith.addf %152, %154 : vector<8x32xf32>
    %c0_101 = arith.constant 0 : index
    %c0_102 = arith.constant 0 : index
    %c0_103 = arith.constant 0 : index
    %156 = vector.load %arg17[%c0_101, %c0_102, %c0_103] : memref<1x8x32xf32, #tpu.memory_space<vmem>>, vector<1x8x32xf32>
    %157 = vector.shape_cast %156 : vector<1x8x32xf32> to vector<8x32xf32>
    %158 = vector.shape_cast %155 : vector<8x32xf32> to vector<1x8x32xf32>
    tpu.vector_store %arg17[%c0_101, %c0_102, %c0_103], %158 {strides = array<i32>} : memref<1x8x32xf32, #tpu.memory_space<vmem>>, vector<1x8x32xf32>,
    return
  }
  func.func @transform_0(%arg0: i32, %arg1: i32, %arg2: memref<2xi32, #tpu.memory_space<smem>>) -> (i32, i32, i32) {
    %c0_i32 = arith.constant 0 : i32
    %c0_i32_0 = arith.constant 0 : i32
    return %arg0, %arg1, %c0_i32 : i32, i32, i32
  }
  func.func @transform_1(%arg0: i32, %arg1: i32, %arg2: memref<2xi32, #tpu.memory_space<smem>>) -> (i32, i32, i32) {
    %c0_i32 = arith.constant 0 : i32
    %c0_i32_0 = arith.constant 0 : i32
    %c0_i32_1 = arith.constant 0 : i32
    return %arg0, %c0_i32, %c0_i32_0 : i32, i32, i32
  }
  func.func @transform_2(%arg0: i32, %arg1: i32, %arg2: memref<2xi32, #tpu.memory_space<smem>>) -> (i32, i32) {
    %c0_i32 = arith.constant 0 : i32
    %c0_i32_0 = arith.constant 0 : i32
    %c0_i32_1 = arith.constant 0 : i32
    return %c0_i32, %c0_i32_0 : i32, i32
  }
  func.func @transform_3(%arg0: i32, %arg1: i32, %arg2: memref<2xi32, #tpu.memory_space<smem>>) -> (i32, i32) {
    %c0_i32 = arith.constant 0 : i32
    %c0_i32_0 = arith.constant 0 : i32
    %c0_i32_1 = arith.constant 0 : i32
    return %c0_i32, %c0_i32_0 : i32, i32
  }
  func.func @transform_4(%arg0: i32, %arg1: i32, %arg2: memref<2xi32, #tpu.memory_space<smem>>) -> (i32, i32) {
    %c0_i32 = arith.constant 0 : i32
    %c0_i32_0 = arith.constant 0 : i32
    %c0_i32_1 = arith.constant 0 : i32
    return %c0_i32, %c0_i32_0 : i32, i32
  }
  func.func @transform_5(%arg0: i32, %arg1: i32, %arg2: memref<2xi32, #tpu.memory_space<smem>>) -> (i32, i32) {
    %c0_i32 = arith.constant 0 : i32
    %c0_i32_0 = arith.constant 0 : i32
    %c0_i32_1 = arith.constant 0 : i32
    return %c0_i32, %c0_i32_0 : i32, i32
  }
  func.func @transform_6(%arg0: i32, %arg1: i32, %arg2: memref<2xi32, #tpu.memory_space<smem>>) -> (i32, i32) {
    %c0_i32 = arith.constant 0 : i32
    %c0_i32_0 = arith.constant 0 : i32
    %c0_i32_1 = arith.constant 0 : i32
    return %c0_i32, %c0_i32_0 : i32, i32
  }
  func.func @transform_7(%arg0: i32, %arg1: i32, %arg2: memref<2xi32, #tpu.memory_space<smem>>) -> (i32, i32) {
    %c0_i32 = arith.constant 0 : i32
    %c0_i32_0 = arith.constant 0 : i32
    %c0_i32_1 = arith.constant 0 : i32
    return %c0_i32, %c0_i32_0 : i32, i32
  }
  func.func @transform_8(%arg0: i32, %arg1: i32, %arg2: memref<2xi32, #tpu.memory_space<smem>>) -> (i32, i32) {
    %c0_i32 = arith.constant 0 : i32
    %c0_i32_0 = arith.constant 0 : i32
    %c0_i32_1 = arith.constant 0 : i32
    return %c0_i32, %c0_i32_0 : i32, i32
  }
  func.func @transform_9(%arg0: i32, %arg1: i32, %arg2: memref<2xi32, #tpu.memory_space<smem>>) -> (i32, i32) {
    %c0_i32 = arith.constant 0 : i32
    %c0_i32_0 = arith.constant 0 : i32
    %c0_i32_1 = arith.constant 0 : i32
    return %c0_i32, %c0_i32_0 : i32, i32
  }
  func.func @transform_10(%arg0: i32, %arg1: i32, %arg2: memref<2xi32, #tpu.memory_space<smem>>) -> (i32, i32) {
    %c0_i32 = arith.constant 0 : i32
    %c0_i32_0 = arith.constant 0 : i32
    %c0_i32_1 = arith.constant 0 : i32
    return %c0_i32, %c0_i32_0 : i32, i32
  }
  func.func @transform_11(%arg0: i32, %arg1: i32, %arg2: memref<2xi32, #tpu.memory_space<smem>>) -> (i32, i32) {
    %c0_i32 = arith.constant 0 : i32
    %c0_i32_0 = arith.constant 0 : i32
    %c0_i32_1 = arith.constant 0 : i32
    return %c0_i32, %c0_i32_0 : i32, i32
  }
  func.func @transform_12(%arg0: i32, %arg1: i32, %arg2: memref<2xi32, #tpu.memory_space<smem>>) -> (i32, i32) {
    %c0_i32 = arith.constant 0 : i32
    %c0_i32_0 = arith.constant 0 : i32
    %c0_i32_1 = arith.constant 0 : i32
    return %c0_i32, %c0_i32_0 : i32, i32
  }
  func.func @transform_13(%arg0: i32, %arg1: i32, %arg2: memref<2xi32, #tpu.memory_space<smem>>) -> (i32, i32) {
    %c0_i32 = arith.constant 0 : i32
    %c0_i32_0 = arith.constant 0 : i32
    %c0_i32_1 = arith.constant 0 : i32
    return %c0_i32, %c0_i32_0 : i32, i32
  }
  func.func @transform_14(%arg0: i32, %arg1: i32, %arg2: memref<2xi32, #tpu.memory_space<smem>>) -> (i32, i32, i32) {
    %c0_i32 = arith.constant 0 : i32
    %c0_i32_0 = arith.constant 0 : i32
    return %arg0, %arg1, %c0_i32 : i32, i32, i32
  }
}

module attributes {stable_mosaic.version = 11 : i64} {
  func.func @_encoder_block_kernel(%arg0: i32, %arg1: i32, %arg2: memref<2xi32, #tpu.memory_space<smem>>, %arg3: memref<1x8x32xf32, #tpu.memory_space<vmem>>, %arg4: memref<1x8x32xf32, #tpu.memory_space<vmem>>, %arg5: memref<32x32xf32, #tpu.memory_space<vmem>>, %arg6: memref<32x32xf32, #tpu.memory_space<vmem>>, %arg7: memref<32x32xf32, #tpu.memory_space<vmem>>, %arg8: memref<32x32xf32, #tpu.memory_space<vmem>>, %arg9: memref<1x32xf32, #tpu.memory_space<vmem>>, %arg10: memref<1x32xf32, #tpu.memory_space<vmem>>, %arg11: memref<32x64xf32, #tpu.memory_space<vmem>>, %arg12: memref<1x64xf32, #tpu.memory_space<vmem>>, %arg13: memref<64x32xf32, #tpu.memory_space<vmem>>, %arg14: memref<1x32xf32, #tpu.memory_space<vmem>>, %arg15: memref<1x32xf32, #tpu.memory_space<vmem>>, %arg16: memref<1x32xf32, #tpu.memory_space<vmem>>, %arg17: memref<1x8x32xf32, #tpu.memory_space<vmem>>, %arg18: memref<8x32xf32, #tpu.memory_space<vmem>>, %arg19: memref<8x32xf32, #tpu.memory_space<vmem>>, %arg20: memref<8x32xf32, #tpu.memory_space<vmem>>, %arg21: memref<8x32xf32, #tpu.memory_space<vmem>>) attributes {dimension_semantics = [#tpu.dimension_semantics<parallel>, #tpu.dimension_semantics<parallel>], iteration_bounds = array<i64: 2, 1>, scalar_prefetch = 1 : i64, scratch_operands = 4 : i64, tpu.core_type = #tpu.core_type<tc>, window_params = [{transform_indices = @transform_0, window_bounds = array<i64: 1, 8, 32>}, {transform_indices = @transform_1, window_bounds = array<i64: 1, 8, 32>}, {pipeline_mode = #tpu.pipeline_mode<synchronous>, transform_indices = @transform_2, window_bounds = array<i64: 32, 32>}, {pipeline_mode = #tpu.pipeline_mode<synchronous>, transform_indices = @transform_3, window_bounds = array<i64: 32, 32>}, {pipeline_mode = #tpu.pipeline_mode<synchronous>, transform_indices = @transform_4, window_bounds = array<i64: 32, 32>}, {pipeline_mode = #tpu.pipeline_mode<synchronous>, transform_indices = @transform_5, window_bounds = array<i64: 32, 32>}, {pipeline_mode = #tpu.pipeline_mode<synchronous>, transform_indices = @transform_6, window_bounds = array<i64: 1, 32>}, {pipeline_mode = #tpu.pipeline_mode<synchronous>, transform_indices = @transform_7, window_bounds = array<i64: 1, 32>}, {pipeline_mode = #tpu.pipeline_mode<synchronous>, transform_indices = @transform_8, window_bounds = array<i64: 32, 64>}, {pipeline_mode = #tpu.pipeline_mode<synchronous>, transform_indices = @transform_9, window_bounds = array<i64: 1, 64>}, {pipeline_mode = #tpu.pipeline_mode<synchronous>, transform_indices = @transform_10, window_bounds = array<i64: 64, 32>}, {pipeline_mode = #tpu.pipeline_mode<synchronous>, transform_indices = @transform_11, window_bounds = array<i64: 1, 32>}, {pipeline_mode = #tpu.pipeline_mode<synchronous>, transform_indices = @transform_12, window_bounds = array<i64: 1, 32>}, {pipeline_mode = #tpu.pipeline_mode<synchronous>, transform_indices = @transform_13, window_bounds = array<i64: 1, 32>}, {transform_indices = @transform_14, window_bounds = array<i64: 1, 8, 32>}]} {
    %c0 = arith.constant 0 : index
    %c0_0 = arith.constant 0 : index
    %c0_1 = arith.constant 0 : index
    %0 = vector.load %arg3[%c0, %c0_0, %c0_1] : memref<1x8x32xf32, #tpu.memory_space<vmem>>, vector<1x8x32xf32>
    %1 = vector.shape_cast %0 : vector<1x8x32xf32> to vector<8x32xf32>
    %c0_2 = arith.constant 0 : index
    %c0_3 = arith.constant 0 : index
    %c0_4 = arith.constant 0 : index
    %2 = vector.load %arg4[%c0_2, %c0_3, %c0_4] : memref<1x8x32xf32, #tpu.memory_space<vmem>>, vector<1x8x32xf32>
    %3 = vector.shape_cast %2 : vector<1x8x32xf32> to vector<8x32xf32>
    %c0_5 = arith.constant 0 : index
    %c0_6 = arith.constant 0 : index
    %4 = vector.load %arg5[%c0_5, %c0_6] : memref<32x32xf32, #tpu.memory_space<vmem>>, vector<32x32xf32>
    %cst = arith.constant dense<0.000000e+00> : vector<8x32xf32>
    %5 = tpu.matmul %1, %4, %cst {dimension_numbers = #tpu.dot_dimension_numbers<[1], [0], [0], [1], [0, 0, 1, 1], [], []>} : vector<8x32xf32>, vector<32x32xf32>, vector<8x32xf32> -> vector<8x32xf32>
    %cst_7 = arith.constant 0.353553385 : f32
    %6 = vector.broadcast %cst_7 : f32 to vector<8x32xf32>
    %7 = arith.mulf %5, %6 : vector<8x32xf32>
    %c0_8 = arith.constant 0 : index
    %c0_9 = arith.constant 0 : index
    %8 = vector.load %arg18[%c0_8, %c0_9] : memref<8x32xf32, #tpu.memory_space<vmem>>, vector<8x32xf32>
    tpu.vector_store %arg18[%c0_8, %c0_9], %7 {strides = array<i32>} : memref<8x32xf32, #tpu.memory_space<vmem>>, vector<8x32xf32>,
    %c0_10 = arith.constant 0 : index
    %c0_11 = arith.constant 0 : index
    %9 = vector.load %arg6[%c0_10, %c0_11] : memref<32x32xf32, #tpu.memory_space<vmem>>, vector<32x32xf32>
    %cst_12 = arith.constant dense<0.000000e+00> : vector<8x32xf32>
    %10 = tpu.matmul %3, %9, %cst_12 {dimension_numbers = #tpu.dot_dimension_numbers<[1], [0], [0], [1], [0, 0, 1, 1], [], []>} : vector<8x32xf32>, vector<32x32xf32>, vector<8x32xf32> -> vector<8x32xf32>
    %c0_13 = arith.constant 0 : index
    %c0_14 = arith.constant 0 : index
    %11 = vector.load %arg19[%c0_13, %c0_14] : memref<8x32xf32, #tpu.memory_space<vmem>>, vector<8x32xf32>
    tpu.vector_store %arg19[%c0_13, %c0_14], %10 {strides = array<i32>} : memref<8x32xf32, #tpu.memory_space<vmem>>, vector<8x32xf32>,
    %c0_15 = arith.constant 0 : index
    %c0_16 = arith.constant 0 : index
    %12 = vector.load %arg7[%c0_15, %c0_16] : memref<32x32xf32, #tpu.memory_space<vmem>>, vector<32x32xf32>
    %cst_17 = arith.constant dense<0.000000e+00> : vector<8x32xf32>
    %13 = tpu.matmul %3, %12, %cst_17 {dimension_numbers = #tpu.dot_dimension_numbers<[1], [0], [0], [1], [0, 0, 1, 1], [], []>} : vector<8x32xf32>, vector<32x32xf32>, vector<8x32xf32> -> vector<8x32xf32>
    %c0_18 = arith.constant 0 : index
    %c0_19 = arith.constant 0 : index
    %14 = vector.load %arg20[%c0_18, %c0_19] : memref<8x32xf32, #tpu.memory_space<vmem>>, vector<8x32xf32>
    tpu.vector_store %arg20[%c0_18, %c0_19], %13 {strides = array<i32>} : memref<8x32xf32, #tpu.memory_space<vmem>>, vector<8x32xf32>,
    %15 = arith.index_cast %arg0 : i32 to index
    %16 = memref.load %arg2[%15] : memref<2xi32, #tpu.memory_space<smem>>
    %17 = tpu.iota {dimensions = array<i32: 1>} : vector<8x8xi32>
    %18 = vector.broadcast %16 : i32 to vector<8x8xi32>
    %19 = arith.cmpi slt, %17, %18 : vector<8x8xi32>
    %cst_20 = arith.constant 0.000000e+00 : f32
    %cst_21 = arith.constant -1.000000e+06 : f32
    %20 = vector.broadcast %cst_20 : f32 to vector<8x8xf32>
    %21 = vector.broadcast %cst_21 : f32 to vector<8x8xf32>
    %22 = arith.select %19, %20, %21 : vector<8x8xi1>, vector<8x8xf32>
    %c0_22 = arith.constant 0 : index
    %c0_23 = arith.constant 0 : index
    %23 = vector.load %arg18[%c0_22, %c0_23] : memref<8x32xf32, #tpu.memory_space<vmem>>, vector<8x8xf32>
    %c0_24 = arith.constant 0 : index
    %c0_25 = arith.constant 0 : index
    %24 = vector.load %arg19[%c0_24, %c0_25] : memref<8x32xf32, #tpu.memory_space<vmem>>, vector<8x8xf32>
    %c0_26 = arith.constant 0 : index
    %c0_27 = arith.constant 0 : index
    %25 = vector.load %arg20[%c0_26, %c0_27] : memref<8x32xf32, #tpu.memory_space<vmem>>, vector<8x8xf32>
    %cst_28 = arith.constant dense<0.000000e+00> : vector<8x8xf32>
    %26 = tpu.matmul %23, %24, %cst_28 {dimension_numbers = #tpu.dot_dimension_numbers<[1], [1], [0], [0], [0, 0, 1, 0], [], []>} : vector<8x8xf32>, vector<8x8xf32>, vector<8x8xf32> -> vector<8x8xf32>
    %27 = arith.addf %26, %22 : vector<8x8xf32>
    %cst_29 = arith.constant dense<0xFF800000> : vector<8xf32>
    %28 = vector.multi_reduction <maximumf>, %27, %cst_29 [1] : vector<8x8xf32> to vector<8xf32>
    %29 = vector.shape_cast %28 : vector<8xf32> to vector<8x1xf32>
    %30 = vector.broadcast %29 : vector<8x1xf32> to vector<8x8xf32>
    %31 = arith.subf %27, %30 : vector<8x8xf32>
    %32 = math.exp %31 : vector<8x8xf32>
    %cst_30 = arith.constant dense<0.000000e+00> : vector<8xf32>
    %33 = vector.multi_reduction <add>, %32, %cst_30 [1] : vector<8x8xf32> to vector<8xf32>
    %34 = vector.shape_cast %33 : vector<8xf32> to vector<8x1xf32>
    %35 = tpu.reciprocal %34 : vector<8x1xf32> -> vector<8x1xf32>
    %36 = vector.broadcast %35 : vector<8x1xf32> to vector<8x8xf32>
    %37 = arith.mulf %32, %36 : vector<8x8xf32>
    %cst_31 = arith.constant dense<0.000000e+00> : vector<8x8xf32>
    %38 = tpu.matmul %37, %25, %cst_31 {dimension_numbers = #tpu.dot_dimension_numbers<[1], [0], [0], [1], [0, 0, 1, 1], [], []>} : vector<8x8xf32>, vector<8x8xf32>, vector<8x8xf32> -> vector<8x8xf32>
    %c0_32 = arith.constant 0 : index
    %c0_33 = arith.constant 0 : index
    %39 = vector.load %arg21[%c0_32, %c0_33] : memref<8x32xf32, #tpu.memory_space<vmem>>, vector<8x8xf32>
    tpu.vector_store %arg21[%c0_32, %c0_33], %38 {strides = array<i32>} : memref<8x32xf32, #tpu.memory_space<vmem>>, vector<8x8xf32>,
    %c0_34 = arith.constant 0 : index
    %c8 = arith.constant 8 : index
    %40 = vector.load %arg18[%c0_34, %c8] : memref<8x32xf32, #tpu.memory_space<vmem>>, vector<8x8xf32>
    %c0_35 = arith.constant 0 : index
    %c8_36 = arith.constant 8 : index
    %41 = vector.load %arg19[%c0_35, %c8_36] : memref<8x32xf32, #tpu.memory_space<vmem>>, vector<8x8xf32>
    %c0_37 = arith.constant 0 : index
    %c8_38 = arith.constant 8 : index
    %42 = vector.load %arg20[%c0_37, %c8_38] : memref<8x32xf32, #tpu.memory_space<vmem>>, vector<8x8xf32>
    %cst_39 = arith.constant dense<0.000000e+00> : vector<8x8xf32>
    %43 = tpu.matmul %40, %41, %cst_39 {dimension_numbers = #tpu.dot_dimension_numbers<[1], [1], [0], [0], [0, 0, 1, 0], [], []>} : vector<8x8xf32>, vector<8x8xf32>, vector<8x8xf32> -> vector<8x8xf32>
    %44 = arith.addf %43, %22 : vector<8x8xf32>
    %cst_40 = arith.constant dense<0xFF800000> : vector<8xf32>
    %45 = vector.multi_reduction <maximumf>, %44, %cst_40 [1] : vector<8x8xf32> to vector<8xf32>
    %46 = vector.shape_cast %45 : vector<8xf32> to vector<8x1xf32>
    %47 = vector.broadcast %46 : vector<8x1xf32> to vector<8x8xf32>
    %48 = arith.subf %44, %47 : vector<8x8xf32>
    %49 = math.exp %48 : vector<8x8xf32>
    %cst_41 = arith.constant dense<0.000000e+00> : vector<8xf32>
    %50 = vector.multi_reduction <add>, %49, %cst_41 [1] : vector<8x8xf32> to vector<8xf32>
    %51 = vector.shape_cast %50 : vector<8xf32> to vector<8x1xf32>
    %52 = tpu.reciprocal %51 : vector<8x1xf32> -> vector<8x1xf32>
    %53 = vector.broadcast %52 : vector<8x1xf32> to vector<8x8xf32>
    %54 = arith.mulf %49, %53 : vector<8x8xf32>
    %cst_42 = arith.constant dense<0.000000e+00> : vector<8x8xf32>
    %55 = tpu.matmul %54, %42, %cst_42 {dimension_numbers = #tpu.dot_dimension_numbers<[1], [0], [0], [1], [0, 0, 1, 1], [], []>} : vector<8x8xf32>, vector<8x8xf32>, vector<8x8xf32> -> vector<8x8xf32>
    %c0_43 = arith.constant 0 : index
    %c8_44 = arith.constant 8 : index
    %56 = vector.load %arg21[%c0_43, %c8_44] : memref<8x32xf32, #tpu.memory_space<vmem>>, vector<8x8xf32>
    tpu.vector_store %arg21[%c0_43, %c8_44], %55 {strides = array<i32>} : memref<8x32xf32, #tpu.memory_space<vmem>>, vector<8x8xf32>,
    %c0_45 = arith.constant 0 : index
    %c16 = arith.constant 16 : index
    %57 = vector.load %arg18[%c0_45, %c16] : memref<8x32xf32, #tpu.memory_space<vmem>>, vector<8x8xf32>
    %c0_46 = arith.constant 0 : index
    %c16_47 = arith.constant 16 : index
    %58 = vector.load %arg19[%c0_46, %c16_47] : memref<8x32xf32, #tpu.memory_space<vmem>>, vector<8x8xf32>
    %c0_48 = arith.constant 0 : index
    %c16_49 = arith.constant 16 : index
    %59 = vector.load %arg20[%c0_48, %c16_49] : memref<8x32xf32, #tpu.memory_space<vmem>>, vector<8x8xf32>
    %cst_50 = arith.constant dense<0.000000e+00> : vector<8x8xf32>
    %60 = tpu.matmul %57, %58, %cst_50 {dimension_numbers = #tpu.dot_dimension_numbers<[1], [1], [0], [0], [0, 0, 1, 0], [], []>} : vector<8x8xf32>, vector<8x8xf32>, vector<8x8xf32> -> vector<8x8xf32>
    %61 = arith.addf %60, %22 : vector<8x8xf32>
    %cst_51 = arith.constant dense<0xFF800000> : vector<8xf32>
    %62 = vector.multi_reduction <maximumf>, %61, %cst_51 [1] : vector<8x8xf32> to vector<8xf32>
    %63 = vector.shape_cast %62 : vector<8xf32> to vector<8x1xf32>
    %64 = vector.broadcast %63 : vector<8x1xf32> to vector<8x8xf32>
    %65 = arith.subf %61, %64 : vector<8x8xf32>
    %66 = math.exp %65 : vector<8x8xf32>
    %cst_52 = arith.constant dense<0.000000e+00> : vector<8xf32>
    %67 = vector.multi_reduction <add>, %66, %cst_52 [1] : vector<8x8xf32> to vector<8xf32>
    %68 = vector.shape_cast %67 : vector<8xf32> to vector<8x1xf32>
    %69 = tpu.reciprocal %68 : vector<8x1xf32> -> vector<8x1xf32>
    %70 = vector.broadcast %69 : vector<8x1xf32> to vector<8x8xf32>
    %71 = arith.mulf %66, %70 : vector<8x8xf32>
    %cst_53 = arith.constant dense<0.000000e+00> : vector<8x8xf32>
    %72 = tpu.matmul %71, %59, %cst_53 {dimension_numbers = #tpu.dot_dimension_numbers<[1], [0], [0], [1], [0, 0, 1, 1], [], []>} : vector<8x8xf32>, vector<8x8xf32>, vector<8x8xf32> -> vector<8x8xf32>
    %c0_54 = arith.constant 0 : index
    %c16_55 = arith.constant 16 : index
    %73 = vector.load %arg21[%c0_54, %c16_55] : memref<8x32xf32, #tpu.memory_space<vmem>>, vector<8x8xf32>
    tpu.vector_store %arg21[%c0_54, %c16_55], %72 {strides = array<i32>} : memref<8x32xf32, #tpu.memory_space<vmem>>, vector<8x8xf32>,
    %c0_56 = arith.constant 0 : index
    %c24 = arith.constant 24 : index
    %74 = vector.load %arg18[%c0_56, %c24] : memref<8x32xf32, #tpu.memory_space<vmem>>, vector<8x8xf32>
    %c0_57 = arith.constant 0 : index
    %c24_58 = arith.constant 24 : index
    %75 = vector.load %arg19[%c0_57, %c24_58] : memref<8x32xf32, #tpu.memory_space<vmem>>, vector<8x8xf32>
    %c0_59 = arith.constant 0 : index
    %c24_60 = arith.constant 24 : index
    %76 = vector.load %arg20[%c0_59, %c24_60] : memref<8x32xf32, #tpu.memory_space<vmem>>, vector<8x8xf32>
    %cst_61 = arith.constant dense<0.000000e+00> : vector<8x8xf32>
    %77 = tpu.matmul %74, %75, %cst_61 {dimension_numbers = #tpu.dot_dimension_numbers<[1], [1], [0], [0], [0, 0, 1, 0], [], []>} : vector<8x8xf32>, vector<8x8xf32>, vector<8x8xf32> -> vector<8x8xf32>
    %78 = arith.addf %77, %22 : vector<8x8xf32>
    %cst_62 = arith.constant dense<0xFF800000> : vector<8xf32>
    %79 = vector.multi_reduction <maximumf>, %78, %cst_62 [1] : vector<8x8xf32> to vector<8xf32>
    %80 = vector.shape_cast %79 : vector<8xf32> to vector<8x1xf32>
    %81 = vector.broadcast %80 : vector<8x1xf32> to vector<8x8xf32>
    %82 = arith.subf %78, %81 : vector<8x8xf32>
    %83 = math.exp %82 : vector<8x8xf32>
    %cst_63 = arith.constant dense<0.000000e+00> : vector<8xf32>
    %84 = vector.multi_reduction <add>, %83, %cst_63 [1] : vector<8x8xf32> to vector<8xf32>
    %85 = vector.shape_cast %84 : vector<8xf32> to vector<8x1xf32>
    %86 = tpu.reciprocal %85 : vector<8x1xf32> -> vector<8x1xf32>
    %87 = vector.broadcast %86 : vector<8x1xf32> to vector<8x8xf32>
    %88 = arith.mulf %83, %87 : vector<8x8xf32>
    %cst_64 = arith.constant dense<0.000000e+00> : vector<8x8xf32>
    %89 = tpu.matmul %88, %76, %cst_64 {dimension_numbers = #tpu.dot_dimension_numbers<[1], [0], [0], [1], [0, 0, 1, 1], [], []>} : vector<8x8xf32>, vector<8x8xf32>, vector<8x8xf32> -> vector<8x8xf32>
    %c0_65 = arith.constant 0 : index
    %c24_66 = arith.constant 24 : index
    %90 = vector.load %arg21[%c0_65, %c24_66] : memref<8x32xf32, #tpu.memory_space<vmem>>, vector<8x8xf32>
    tpu.vector_store %arg21[%c0_65, %c24_66], %89 {strides = array<i32>} : memref<8x32xf32, #tpu.memory_space<vmem>>, vector<8x8xf32>,
    %c0_67 = arith.constant 0 : index
    %c0_68 = arith.constant 0 : index
    %91 = vector.load %arg21[%c0_67, %c0_68] : memref<8x32xf32, #tpu.memory_space<vmem>>, vector<8x32xf32>
    %c0_69 = arith.constant 0 : index
    %c0_70 = arith.constant 0 : index
    %92 = vector.load %arg8[%c0_69, %c0_70] : memref<32x32xf32, #tpu.memory_space<vmem>>, vector<32x32xf32>
    %cst_71 = arith.constant dense<0.000000e+00> : vector<8x32xf32>
    %93 = tpu.matmul %91, %92, %cst_71 {dimension_numbers = #tpu.dot_dimension_numbers<[1], [0], [0], [1], [0, 0, 1, 1], [], []>} : vector<8x32xf32>, vector<32x32xf32>, vector<8x32xf32> -> vector<8x32xf32>
    %94 = arith.addf %93, %1 : vector<8x32xf32>
    %cst_72 = arith.constant dense<0.000000e+00> : vector<8xf32>
    %95 = vector.multi_reduction <add>, %94, %cst_72 [1] : vector<8x32xf32> to vector<8xf32>
    %96 = vector.shape_cast %95 : vector<8xf32> to vector<8x1xf32>
    %cst_73 = arith.constant 3.200000e+01 : f32
    %97 = vector.broadcast %cst_73 : f32 to vector<8x1xf32>
    %98 = arith.divf %96, %97 : vector<8x1xf32>
    %99 = arith.mulf %94, %94 : vector<8x32xf32>
    %cst_74 = arith.constant dense<0.000000e+00> : vector<8xf32>
    %100 = vector.multi_reduction <add>, %99, %cst_74 [1] : vector<8x32xf32> to vector<8xf32>
    %101 = vector.shape_cast %100 : vector<8xf32> to vector<8x1xf32>
    %cst_75 = arith.constant 3.200000e+01 : f32
    %102 = vector.broadcast %cst_75 : f32 to vector<8x1xf32>
    %103 = arith.divf %101, %102 : vector<8x1xf32>
    %104 = arith.mulf %98, %98 : vector<8x1xf32>
    %105 = arith.subf %103, %104 : vector<8x1xf32>
    %cst_76 = arith.constant 9.99999974E-6 : f32
    %106 = vector.broadcast %cst_76 : f32 to vector<8x1xf32>
    %107 = arith.addf %105, %106 : vector<8x1xf32>
    %108 = math.rsqrt %107 : vector<8x1xf32>
    %109 = vector.broadcast %98 : vector<8x1xf32> to vector<8x32xf32>
    %110 = arith.subf %94, %109 : vector<8x32xf32>
    %111 = vector.broadcast %108 : vector<8x1xf32> to vector<8x32xf32>
    %112 = arith.mulf %110, %111 : vector<8x32xf32>
    %c0_77 = arith.constant 0 : index
    %c0_78 = arith.constant 0 : index
    %113 = vector.load %arg9[%c0_77, %c0_78] : memref<1x32xf32, #tpu.memory_space<vmem>>, vector<1x32xf32>
    %114 = vector.broadcast %113 : vector<1x32xf32> to vector<8x32xf32>
    %115 = arith.mulf %112, %114 : vector<8x32xf32>
    %c0_79 = arith.constant 0 : index
    %c0_80 = arith.constant 0 : index
    %116 = vector.load %arg10[%c0_79, %c0_80] : memref<1x32xf32, #tpu.memory_space<vmem>>, vector<1x32xf32>
    %117 = vector.broadcast %116 : vector<1x32xf32> to vector<8x32xf32>
    %118 = arith.addf %115, %117 : vector<8x32xf32>
    %c0_81 = arith.constant 0 : index
    %c0_82 = arith.constant 0 : index
    %119 = vector.load %arg11[%c0_81, %c0_82] : memref<32x64xf32, #tpu.memory_space<vmem>>, vector<32x64xf32>
    %cst_83 = arith.constant dense<0.000000e+00> : vector<8x64xf32>
    %120 = tpu.matmul %118, %119, %cst_83 {dimension_numbers = #tpu.dot_dimension_numbers<[1], [0], [0], [1], [0, 0, 1, 1], [], []>} : vector<8x32xf32>, vector<32x64xf32>, vector<8x64xf32> -> vector<8x64xf32>
    %c0_84 = arith.constant 0 : index
    %c0_85 = arith.constant 0 : index
    %121 = vector.load %arg12[%c0_84, %c0_85] : memref<1x64xf32, #tpu.memory_space<vmem>>, vector<1x64xf32>
    %122 = vector.broadcast %121 : vector<1x64xf32> to vector<8x64xf32>
    %123 = arith.addf %120, %122 : vector<8x64xf32>
    %cst_86 = arith.constant 0.000000e+00 : f32
    %124 = vector.broadcast %cst_86 : f32 to vector<8x64xf32>
    %125 = arith.maximumf %123, %124 : vector<8x64xf32>
    %c0_87 = arith.constant 0 : index
    %c0_88 = arith.constant 0 : index
    %126 = vector.load %arg13[%c0_87, %c0_88] : memref<64x32xf32, #tpu.memory_space<vmem>>, vector<64x32xf32>
    %cst_89 = arith.constant dense<0.000000e+00> : vector<8x32xf32>
    %127 = tpu.matmul %125, %126, %cst_89 {dimension_numbers = #tpu.dot_dimension_numbers<[1], [0], [0], [1], [0, 0, 1, 1], [], []>} : vector<8x64xf32>, vector<64x32xf32>, vector<8x32xf32> -> vector<8x32xf32>
    %c0_90 = arith.constant 0 : index
    %c0_91 = arith.constant 0 : index
    %128 = vector.load %arg14[%c0_90, %c0_91] : memref<1x32xf32, #tpu.memory_space<vmem>>, vector<1x32xf32>
    %129 = vector.broadcast %128 : vector<1x32xf32> to vector<8x32xf32>
    %130 = arith.addf %127, %129 : vector<8x32xf32>
    %131 = arith.addf %130, %118 : vector<8x32xf32>
    %cst_92 = arith.constant dense<0.000000e+00> : vector<8xf32>
    %132 = vector.multi_reduction <add>, %131, %cst_92 [1] : vector<8x32xf32> to vector<8xf32>
    %133 = vector.shape_cast %132 : vector<8xf32> to vector<8x1xf32>
    %cst_93 = arith.constant 3.200000e+01 : f32
    %134 = vector.broadcast %cst_93 : f32 to vector<8x1xf32>
    %135 = arith.divf %133, %134 : vector<8x1xf32>
    %136 = arith.mulf %131, %131 : vector<8x32xf32>
    %cst_94 = arith.constant dense<0.000000e+00> : vector<8xf32>
    %137 = vector.multi_reduction <add>, %136, %cst_94 [1] : vector<8x32xf32> to vector<8xf32>
    %138 = vector.shape_cast %137 : vector<8xf32> to vector<8x1xf32>
    %cst_95 = arith.constant 3.200000e+01 : f32
    %139 = vector.broadcast %cst_95 : f32 to vector<8x1xf32>
    %140 = arith.divf %138, %139 : vector<8x1xf32>
    %141 = arith.mulf %135, %135 : vector<8x1xf32>
    %142 = arith.subf %140, %141 : vector<8x1xf32>
    %cst_96 = arith.constant 9.99999974E-6 : f32
    %143 = vector.broadcast %cst_96 : f32 to vector<8x1xf32>
    %144 = arith.addf %142, %143 : vector<8x1xf32>
    %145 = math.rsqrt %144 : vector<8x1xf32>
    %146 = vector.broadcast %135 : vector<8x1xf32> to vector<8x32xf32>
    %147 = arith.subf %131, %146 : vector<8x32xf32>
    %148 = vector.broadcast %145 : vector<8x1xf32> to vector<8x32xf32>
    %149 = arith.mulf %147, %148 : vector<8x32xf32>
    %c0_97 = arith.constant 0 : index
    %c0_98 = arith.constant 0 : index
    %150 = vector.load %arg15[%c0_97, %c0_98] : memref<1x32xf32, #tpu.memory_space<vmem>>, vector<1x32xf32>
    %151 = vector.broadcast %150 : vector<1x32xf32> to vector<8x32xf32>
    %152 = arith.mulf %149, %151 : vector<8x32xf32>
    %c0_99 = arith.constant 0 : index
    %c0_100 = arith.constant 0 : index
    %153 = vector.load %arg16[%c0_99, %c0_100] : memref<1x32xf32, #tpu.memory_space<vmem>>, vector<1x32xf32>
    %154 = vector.broadcast %153 : vector<1x32xf32> to vector<8x32xf32>
    %155 = arith.addf %152, %154 : vector<8x32xf32>
    %c0_101 = arith.constant 0 : index
    %c0_102 = arith.constant 0 : index
    %c0_103 = arith.constant 0 : index
    %156 = vector.load %arg17[%c0_101, %c0_102, %c0_103] : memref<1x8x32xf32, #tpu.memory_space<vmem>>, vector<1x8x32xf32>
    %157 = vector.shape_cast %156 : vector<1x8x32xf32> to vector<8x32xf32>
    %158 = vector.shape_cast %155 : vector<8x32xf32> to vector<1x8x32xf32>
    tpu.vector_store %arg17[%c0_101, %c0_102, %c0_103], %158 {strides = array<i32>} : memref<1x8x32xf32, #tpu.memory_space<vmem>>, vector<1x8x32xf32>,
    return
  }
  func.func @transform_0(%arg0: i32, %arg1: i32, %arg2: memref<2xi32, #tpu.memory_space<smem>>) -> (i32, i32, i32) {
    %c0_i32 = arith.constant 0 : i32
    %c0_i32_0 = arith.constant 0 : i32
    return %arg0, %arg1, %c0_i32 : i32, i32, i32
  }
  func.func @transform_1(%arg0: i32, %arg1: i32, %arg2: memref<2xi32, #tpu.memory_space<smem>>) -> (i32, i32, i32) {
    %c0_i32 = arith.constant 0 : i32
    %c0_i32_0 = arith.constant 0 : i32
    %c0_i32_1 = arith.constant 0 : i32
    return %arg0, %c0_i32, %c0_i32_0 : i32, i32, i32
  }
  func.func @transform_2(%arg0: i32, %arg1: i32, %arg2: memref<2xi32, #tpu.memory_space<smem>>) -> (i32, i32) {
    %c0_i32 = arith.constant 0 : i32
    %c0_i32_0 = arith.constant 0 : i32
    %c0_i32_1 = arith.constant 0 : i32
    return %c0_i32, %c0_i32_0 : i32, i32
  }
  func.func @transform_3(%arg0: i32, %arg1: i32, %arg2: memref<2xi32, #tpu.memory_space<smem>>) -> (i32, i32) {
    %c0_i32 = arith.constant 0 : i32
    %c0_i32_0 = arith.constant 0 : i32
    %c0_i32_1 = arith.constant 0 : i32
    return %c0_i32, %c0_i32_0 : i32, i32
  }
  func.func @transform_4(%arg0: i32, %arg1: i32, %arg2: memref<2xi32, #tpu.memory_space<smem>>) -> (i32, i32) {
    %c0_i32 = arith.constant 0 : i32
    %c0_i32_0 = arith.constant 0 : i32
    %c0_i32_1 = arith.constant 0 : i32
    return %c0_i32, %c0_i32_0 : i32, i32
  }
  func.func @transform_5(%arg0: i32, %arg1: i32, %arg2: memref<2xi32, #tpu.memory_space<smem>>) -> (i32, i32) {
    %c0_i32 = arith.constant 0 : i32
    %c0_i32_0 = arith.constant 0 : i32
    %c0_i32_1 = arith.constant 0 : i32
    return %c0_i32, %c0_i32_0 : i32, i32
  }
  func.func @transform_6(%arg0: i32, %arg1: i32, %arg2: memref<2xi32, #tpu.memory_space<smem>>) -> (i32, i32) {
    %c0_i32 = arith.constant 0 : i32
    %c0_i32_0 = arith.constant 0 : i32
    %c0_i32_1 = arith.constant 0 : i32
    return %c0_i32, %c0_i32_0 : i32, i32
  }
  func.func @transform_7(%arg0: i32, %arg1: i32, %arg2: memref<2xi32, #tpu.memory_space<smem>>) -> (i32, i32) {
    %c0_i32 = arith.constant 0 : i32
    %c0_i32_0 = arith.constant 0 : i32
    %c0_i32_1 = arith.constant 0 : i32
    return %c0_i32, %c0_i32_0 : i32, i32
  }
  func.func @transform_8(%arg0: i32, %arg1: i32, %arg2: memref<2xi32, #tpu.memory_space<smem>>) -> (i32, i32) {
    %c0_i32 = arith.constant 0 : i32
    %c0_i32_0 = arith.constant 0 : i32
    %c0_i32_1 = arith.constant 0 : i32
    return %c0_i32, %c0_i32_0 : i32, i32
  }
  func.func @transform_9(%arg0: i32, %arg1: i32, %arg2: memref<2xi32, #tpu.memory_space<smem>>) -> (i32, i32) {
    %c0_i32 = arith.constant 0 : i32
    %c0_i32_0 = arith.constant 0 : i32
    %c0_i32_1 = arith.constant 0 : i32
    return %c0_i32, %c0_i32_0 : i32, i32
  }
  func.func @transform_10(%arg0: i32, %arg1: i32, %arg2: memref<2xi32, #tpu.memory_space<smem>>) -> (i32, i32) {
    %c0_i32 = arith.constant 0 : i32
    %c0_i32_0 = arith.constant 0 : i32
    %c0_i32_1 = arith.constant 0 : i32
    return %c0_i32, %c0_i32_0 : i32, i32
  }
  func.func @transform_11(%arg0: i32, %arg1: i32, %arg2: memref<2xi32, #tpu.memory_space<smem>>) -> (i32, i32) {
    %c0_i32 = arith.constant 0 : i32
    %c0_i32_0 = arith.constant 0 : i32
    %c0_i32_1 = arith.constant 0 : i32
    return %c0_i32, %c0_i32_0 : i32, i32
  }
  func.func @transform_12(%arg0: i32, %arg1: i32, %arg2: memref<2xi32, #tpu.memory_space<smem>>) -> (i32, i32) {
    %c0_i32 = arith.constant 0 : i32
    %c0_i32_0 = arith.constant 0 : i32
    %c0_i32_1 = arith.constant 0 : i32
    return %c0_i32, %c0_i32_0 : i32, i32
  }
  func.func @transform_13(%arg0: i32, %arg1: i32, %arg2: memref<2xi32, #tpu.memory_space<smem>>) -> (i32, i32) {
    %c0_i32 = arith.constant 0 : i32
    %c0_i32_0 = arith.constant 0 : i32
    %c0_i32_1 = arith.constant 0 : i32
    return %c0_i32, %c0_i32_0 : i32, i32
  }
  func.func @transform_14(%arg0: i32, %arg1: i32, %arg2: memref<2xi32, #tpu.memory_space<smem>>) -> (i32, i32, i32) {
    %c0_i32 = arith.constant 0 : i32
    %c0_i32_0 = arith.constant 0 : i32
    return %arg0, %arg1, %c0_i32 : i32, i32, i32
  }
}

</mosaic_0001>

<bundles_post_ra>
// kernel: tpu_custom_call.1
= control target key start
LH: loop header
LB: loop body
LE: loop exit
PB: predicated region body
PF: predicated region fallthrough
CT: control target
= control target key end

     0   :  { %s2502_s18 = smov [#allocation7]   ;;  %s2993_s0 = inlined_call_operand.hbm [shape: s32[2], index: 0, kind: input, shape index: {}]   ;;  %s2994_s1 = inlined_call_operand.hbm [shape: f32[2,8,32], index: 1, kind: input, shape index: {}]   ;;  %s2995_s2 = inlined_call_operand.hbm [shape: f32[2,8,32], index: 2, kind: input, shape index: {}]   ;;  %s2996_s3 = inlined_call_operand.vmem [shape: f32[32,32], index: 3, kind: input, shape index: {}]   ;;  %s2997_s4 = inlined_call_operand.vmem [shape: f32[32,32], index: 4, kind: input, shape index: {}]   ;;  %s2998_s5 = inlined_call_operand.vmem [shape: f32[32,32], index: 5, kind: input, shape index: {}]   ;;  %s2999_s6 = inlined_call_operand.hbm [shape: f32[32,32], index: 6, kind: input, shape index: {}]   ;;  %s3000_s7 = inlined_call_operand.vmem [shape: f32[1,32], index: 7, kind: input, shape index: {}]   ;;  %s3001_s8 = inlined_call_operand.vmem [shape: f32[1,32], index: 8, kind: input, shape index: {}]   ;;  %s3002_s9 = inlined_call_operand.hbm [shape: f32[32,64], index: 9, kind: input, shape index: {}]   ;;  %s3003_s10 = inlined_call_operand.vmem [shape: f32[1,64], index: 10, kind: input, shape index: {}]   ;;  %s3004_s11 = inlined_call_operand.vmem [shape: f32[64,32], index: 11, kind: input, shape index: {}]   ;;  %s3005_s12 = inlined_call_operand.vmem [shape: f32[1,32], index: 12, kind: input, shape index: {}]   ;;  %s3006_s13 = inlined_call_operand.vmem [shape: f32[1,32], index: 13, kind: input, shape index: {}]   ;;  %s3007_s14 = inlined_call_operand.vmem [shape: f32[1,32], index: 14, kind: input, shape index: {}]   ;;  %s3008_s15 = inlined_call_operand.hbm [shape: f32[2,8,32], index: 15, kind: output, shape index: {}]  }
   0x1   :  { %3015 = sst [smem:[#allocation27_spill]] %s2994_s1 }
   0x2   :  { %3016 = sst [smem:[#allocation28_spill]] %s2995_s2 }
   0x3   :  { %3017 = sst [smem:[#allocation29_spill]] %s2999_s6 }
   0x4   :  { %3018 = sst [smem:[#allocation30_spill]] %s3002_s9 }
   0x5   :  { %3019 = sst [smem:[#allocation31_spill]] %s3005_s12 }
   0x6   :  { %3020 = sst [smem:[#allocation32_spill]] %s3006_s13 }
   0x7   :  { %3021 = sst [smem:[#allocation33_spill]] %s3007_s14 }
   0x8   :  { %3022 = sst [smem:[#allocation34_spill]] %s3008_s15 }
   0x9   :  { %21 = dma.hbm_to_smem %s2993_s0, 16, %s2502_s18, [#allocation6] }
   0xa   :  { %2456 = dma.done.wait [#allocation6], 16 }
   0xb   :  { %2457 = vsyncadd [#allocation6], 4294967280 }
   0xc   :  { %23 = sfence }
   0xd   :  { %24 = vsyncpa [#allocation9], 0 }
   0xe   :  { %26 = vsyncpa [#allocation9 + $0x1], 0 }
   0xf   :  { %27 = vsyncpa [#allocation12], 0 }
  0x10   :  { %29 = vsyncpa [#allocation12 + $0x1], 0 }
  0x11   :  { %30 = vsyncpa [#allocation15], 0 }
  0x12   :  { %31 = vsyncpa [#allocation10], 0 }
  0x13   :  { %33 = vsyncpa [#allocation10 + $0x1], 0  ;;  %s2602_s21 = smov 0   ;;  %s2604_s22 = smov 0  }
  0x14   :  { %s2606_s23 = smov 0   ;;  %s2608_s24 = smov 0  }
  0x15   :  { %s2610_s25 = smov 0   ;;  %s2612_s0 = smov 0  }
  0x16 LB: > { %3023 = sst [smem:[#allocation23_spill]] %s2480_s21  ;;  %s2633_s26 = sadd.s32 4294967295, %s2500_s0   ;;  %s2500_s0 = sphi %s2612_s0, %s39_s0   ;;  %s2496_s25 = sphi %s2610_s25, %s3051_s25   ;;  %s2492_s24 = sphi %s2608_s24, %s3050_s24   ;;  %s2488_s23 = sphi %s2606_s23, %s3054_s23   ;;  %s2484_s22 = sphi %s2604_s22, %s3053_s22   ;;  %s2480_s21 = sphi %s2602_s21, %s3052_s21  }
  0x17   : > { %3024 = sst [smem:[#allocation24_spill]] %s2496_s25  ;;  %s1963_s27 = sadd.s32 4294967294, %s2500_s0  }
  0x18   : > { %p73_p0 = scmp.ne.s32.totalorder %s2484_s22, %s2480_s21  ;;  %p3012_p1 = scmp.eq.s32.totalorder %s2633_s26, 0 }
  0x19   : > { %p383_p3 = scmp.eq.s32.totalorder %s1963_s27, 1  ;;  %p1964_p5 = scmp.ge.s32.totalorder %s2500_s0, 1 }
  0x1a   : > { %p2642_p4 = por %p3012_p1, %p73_p0  ;;  %p390_p7 = scmp.lt.s32.totalorder %s2500_s0, 3 }
  0x1b   : > { %p2647_p6 = por %p383_p3, %p73_p0  ;;  %s2503_s16 = smov [#allocation13]  }
  0x1c   : > { %p2652_p8 = pnand %p1964_p5, %p390_p7  ;;  %s411_s17 = sshll.u32 %s2503_s16, 4  ;;  %s412_s17 = int_to_ptr.vmem [resolvable:$true] %s411_s17 }
  0x1d   : > { %s3026_s29 = scalar_select %p2647_p6, 1, 0 }
  0x1e   : > { %p2184_p9 = pneg %p2652_p8  ;;  %s2504_s19 = smov [#allocation14]  }
  0x1f   : > { %3027 = sst [smem:[#allocation25_spill]] %s3026_s29  ;;  %s430_s20 = sshll.u32 %s2504_s19, 4  ;;  %s431_s20 = int_to_ptr.vmem [resolvable:$true] %s430_s20 }
  0x20   : > { %p2661_p11 = pnand %p2184_p9, %p3012_p1  ;;  %s2309_s27 = scalar_lea.vmem %s412_s17, 512 }
  0x21   : > { %p2310_p13 = scmp.ne.s32.totalorder %s412_s17, %s2309_s27  ;;  %p2317_p5 = scmp.lt.s32.totalorder %s412_s17, %s412_s17 }
  0x22   : > { %p2300_p12 = pneg %p2661_p11  ;;  %p2318_p7 = scmp.lt.s32.totalorder %s2309_s27, %s2309_s27 }
  0x24   : > { %p2312_p0 = pnand %p2310_p13, %p2300_p12  ;;  %p2319_p10 = por %p2318_p7, %p2317_p5 }
  0x26   : > { %p2313_p3 = pneg %p2312_p0 }
  0x28   : > { %p2320_p9 = pnand %p2319_p10, %p2313_p3 }
  0x2a   : > { %2323 = shalt.err (!%p2320_p9)
}
  0x2b   : > { %s2505_s16 = smov 128   ;;  %s2506_s29 = smov 8  }
  0x2c   : > { %s3030_s6 = sld [smem:[#allocation29_spill]]  ;;  %s2335_s15 = scalar_lea.vmem %s431_s20, 512 }
  0x2d   : > { %p2336_p1 = scmp.ne.s32.totalorder %s431_s20, %s2335_s15  ;;  %p2343_p2 = scmp.lt.s32.totalorder %s431_s20, %s431_s20 }
  0x2e   : > { %p2344_p6 = scmp.lt.s32.totalorder %s2335_s15, %s2335_s15 }
  0x2f   : > { %p2338_p13 = pnand %p2336_p1, %p2300_p12 }
  0x30   : > { %p2345_p5 = por %p2344_p6, %p2343_p2 }
  0x31   : > { %p2339_p0 = pneg %p2338_p13 }
  0x32   : > { %2187 = dma.hbm_to_vmem [thread:$0]  (!%p2661_p11), %s3030_s6, 512, %s412_s17, [#allocation12], %s2505_s16, %s2505_s16, %s2506_s29  }
  0x33   : > { %p2346_p10 = pnand %p2345_p5, %p2339_p0 }
  0x35   : > { %2349 = shalt.err (!%p2346_p10)
}
  0x36   : > { %s3031_s9 = sld [smem:[#allocation30_spill]]  ;;  %s51_s15 = sadd.s32 1, %s2496_s25 }
  0x37   : > { %s60_s21 = sadd.s32 1, %s2488_s23  ;;  %p53_p1 = scmp.ge.s32.totalorder %s51_s15, 2 }
  0x38   : > { %p67_p2 = scmp.ne.s32.totalorder %s2488_s23, %s2484_s22  ;;  %p68_p6 = scmp.eq.s32.totalorder %s2500_s0, 0 }
  0x39   : > { %p2204_p12 = scmp.lt.s32.totalorder %s2500_s0, 2  ;;  %s3056_s15 = smov (%p53_p1, %s51_s15), 0 }
  0x3a   : > { %3032 = sst [smem:[#allocation26_spill]] %s3056_s15  ;;  %p69_p3 = por %p68_p6, %p67_p2 }
  0x3b   : > { %p3033_p7 = scmp.eq.s32.totalorder %s2633_s26, 1  ;;  %s55_s17 = ssub.s32 %s2496_s25, %s3056_s15 }
  0x3c   : > { %2190 = dma.hbm_to_vmem [thread:$0]  (!%p2661_p11), %s3031_s9, 512, %s431_s20, [#allocation15], %s2505_s16, %s2505_s16, %s2506_s29  }
  0x3d   : > { %p2693_p9 = por %p3033_p7, %p67_p2  ;;  %s459_s18 = sand.u32 1, %s2488_s23  }
  0x3e   : > { %p58_p13 = scmp.eq.s32.totalorder %s55_s17, 0  ;;  %s1968_s29 = sshll.u32 %s459_s18, 3 }
  0x3f   : > { %s1969_s20 = sshll.u32 %s2496_s25, 7  ;;  %s3035_s1 = sld [smem:[#allocation27_spill]] }
  0x40   : > { %s2702_s16 = scalar_select %p58_p13, %s2488_s23, %s60_s21  }
  0x41   : > { %s463_s9 = scalar_lea.vmem [#allocation8], %s1968_s29  ;;  %p2709_p11 = pnand %p2204_p12, %p69_p3 }
  0x42   : > { %s471_s13 = sshll.u32 %s463_s9, 4  ;;  %s3037_s2 = sld [smem:[#allocation28_spill]]  ;;  %s472_s13 = int_to_ptr.vmem [resolvable:$true] %s471_s13 }
  0x43   : > { %s460_s21 = scalar_lea.sflag [#allocation9], %s459_s18  ;;  %p2352_p0 = pneg %p2709_p11 }
  0x44   : > { %s2363_s19 = scalar_lea.vmem %s472_s13, 128  ;;  %s2507_s9 = smov [#allocation8]  }
  0x45   : > { %s469_s6 = scalar_lea.hbm %s3035_s1, %s1969_s20  ;;  %p2364_p5 = scmp.ne.s32.totalorder %s472_s13, %s2363_s19 }
  0x46   : > { %s2368_s27 = sshll.u32 %s2507_s9, 4  ;;  %s2369_s27 = int_to_ptr.vmem [resolvable:$false] %s2368_s27 }
  0x47   : > { %p2366_p10 = pnand %p2364_p5, %p2352_p0  ;;  %s2370_s1 = scalar_lea.vmem %s2369_s27, 256 }
  0x48   : > { %s2716_s25 = scalar_lea.hbm %s3037_s2, %s1969_s20  ;;  %p2371_p2 = scmp.lt.s32.totalorder %s472_s13, %s2369_s27 }
  0x49   : > { %p2367_p1 = pneg %p2366_p10  ;;  %p2372_p6 = scmp.lt.s32.totalorder %s2370_s1, %s2363_s19 }
  0x4b   : > { %p2373_p12 = por %p2372_p6, %p2371_p2 }
  0x4d   : > { %p2374_p3 = pnand %p2373_p12, %p2367_p1 }
  0x4f   : > { %2377 = shalt.err (!%p2374_p3)
}
  0x50   : > { %2194 = dma.hbm_to_vmem [thread:$0]  (!%p2709_p11), %s469_s6, 128, %s472_s13, %s460_s21  }
  0x51   : > { %s478_s15 = sand.u32 1, %s2500_s0   ;;  %s482_s18 = scalar_lea.vmem [#allocation11], %s1968_s29 }
  0x52   : > { %s489_s20 = sshll.u32 %s482_s18, 4  ;;  %s479_s17 = scalar_lea.sflag [#allocation12], %s478_s15  ;;  %s490_s20 = int_to_ptr.vmem [resolvable:$true] %s489_s20 }
  0x53   : > { %s2391_s2 = scalar_lea.vmem %s490_s20, 128  ;;  %s2508_s1 = smov [#allocation11]  }
  0x54   : > { %p2392_p7 = scmp.ne.s32.totalorder %s490_s20, %s2391_s2  ;;  %s2396_s19 = sshll.u32 %s2508_s1, 4  ;;  %s2397_s19 = int_to_ptr.vmem [resolvable:$false] %s2396_s19 }
  0x55   : > { %s2398_s9 = scalar_lea.vmem %s2397_s19, 256  ;;  %p2399_p10 = scmp.lt.s32.totalorder %s490_s20, %s2397_s19 }
  0x56   : > { %p2394_p13 = pnand %p2392_p7, %p2352_p0  ;;  %p2400_p1 = scmp.lt.s32.totalorder %s2398_s9, %s2391_s2 }
  0x58   : > { %p2395_p5 = pneg %p2394_p13  ;;  %p2401_p2 = por %p2400_p1, %p2399_p10 }
  0x5a   : > { %p2402_p6 = pnand %p2401_p2, %p2395_p5 }
  0x5c   : > { %2405 = shalt.err (!%p2402_p6)
}
  0x5d   : > { %2197 = dma.hbm_to_vmem [thread:$0]  (!%p2709_p11), %s2716_s25, 128, %s490_s20, %s479_s17  }
  0x5e   : > { %498 = sbr.rel (%p2652_p8) target bundleno = 2217 (0x8a9), region = 76  ;;  %s2735_s6 = sand.u32 (!%p2652_p8), 1, %s2484_s22  }
  0x5f   : > { %s2738_s13 = sshll.u32 (!%p2652_p8), %s2735_s6, 3  ;;  %s501_s2 = scalar_lea.sflag (!%p2652_p8), [#allocation9], %s2735_s6 }
  0x60   : > { %s504_s29 = scalar_lea.vmem (!%p2652_p8), [#allocation8], %s2738_s13 }
  0x63   : > { %2459 = dma.done.wait (%p2642_p4), %s501_s2, 128  }
  0x64   : > { %2461 = vsyncadd (%p2642_p4), %s501_s2, 4294967168  ;;  %s509_s12 = sand.u32 1, %s2633_s26   ;;  %s513_s30 = scalar_lea.vmem [#allocation11], %s2738_s13 }
  0x65   : > { %s510_s25 = scalar_lea.sflag [#allocation12], %s509_s12 }
  0x66   : > { %2463 = dma.done.wait (%p2642_p4), %s510_s25, 128  }
  0x67   : > { %2465 = vsyncadd (%p2642_p4), %s510_s25, 4294967168  ;;  %p3038_p8 = scmp.eq.s32.totalorder %s2633_s26, 0 }
  0x69   : > { %2467 = dma.done.wait (%p3038_p8), [#allocation12], 512   ;;  %p3039_p11 = pmov %p3038_p8 }
  0x6a   : > { %p3040_p0 = pmov %p3038_p8 }
  0x6b   : > { %2469 = vsyncadd (%p3039_p11), [#allocation12], 4294966784 }
  0x6c   : > { %2471 = dma.done.wait (%p3040_p0), [#allocation15], 512   ;;  %p3041_p12 = pmov %p3040_p0 }
  0x6d   : > { %v2509_v0 = vmov 0.0   ;;  %vm2510_vm0 = vmmov 0   ;;  %v576_v1 = vld [vmem:[%s2996_s3 + $0x18] sm:$0xff]  ;;  %v575_v2 = vld [vmem:[%s2996_s3 + $0x10] sm:$0xff]  ;;  %v574_v3 = vld [vmem:[%s2996_s3 + $0x8] sm:$0xff]  ;;  %vm577_vm1 = vcmask 261120   ;;  %v807_v30 = vlaneseq }
  0x6e   : > { %2473 = vsyncadd (%p3041_p12), [#allocation15], 4294966784  ;;  %2056 = vmatprep.subr.mxu1 %v2509_v0  ;;  %2064 = vmatprep.mubr.msk.f32.mxu1 %vm2510_vm0, %v2509_v0  ;;  %v573_v4 = vld [vmem:[%s2996_s3] sm:$0xff]  ;;  %v656_v6 = vld [vmem:[%s2997_s4 + $0x18] sm:$0xff]  ;;  %vm815_vm2 = vcmask 64512   ;;  %s2511_s1 = smov 112  }
  0x6f   : > { %2078 = vmatprep.subr.mxu0 %v2509_v0  ;;  %2086 = vmatprep.mubr.msk.f32.mxu0 %vm2510_vm0, %v2509_v0  ;;  %v2780_v5 = vld [vmem:[%s504_s29] sm:$0xff]  ;;  %v655_v7 = vld [vmem:[%s2997_s4 + $0x10] sm:$0xff]  ;;  %v734_v11 = vld [vmem:[%s2998_s5 + $0x18] sm:$0xff]  ;;  %s2512_s19 = smov 120   ;;  %s2513_s9 = smov 104   ;;  %v808_v31 = vand.u32 127, %v807_v30 }
  0x70   : > { %2057 = vmatpush3.msra.mxu1 %v576_v1  ;;  %v654_v8 = vld [vmem:[%s2997_s4 + $0x8] sm:$0xff]  ;;  %v653_v9 = vld [vmem:[%s2997_s4] sm:$0xff]  ;;  %v572_v10 = vld [vmem:[%s513_s30] sm:$0xff]  ;;  %2079 = vmatpush3.msra.mxu0 %v734_v11  ;;  %s806_s2 = sld [smem:[#allocation7 + %s2492_s24]]  ;;  %v2514_v34 = vmov -1000000.0  }
  0x71   : > { %2058 = vmatprep.subr.mxu1 %v2509_v0  ;;  %v733_v12 = vld [vmem:[%s2998_s5 + $0x10] sm:$0xff]  ;;  %2080 = vmatprep.subr.mxu0 %v2509_v0  ;;  %v732_v13 = vld [vmem:[%s2998_s5 + $0x8] sm:$0xff]  ;;  %v731_v14 = vld [vmem:[%s2998_s5] sm:$0xff]  ;;  %s2515_s29 = smov 8   ;;  %s2516_s12 = smov 16   ;;  %vm1152_vm4 = vcmask 130112  }
  0x72   : > { %2059 = vmatpush3.msra.mxu1 %v575_v2  ;;  %2081 = vmatpush3.msra.mxu0 %v733_v12  ;;  %s2517_s25 = smov 24   ;;  %vm1329_vm5 = vcmask 195712   ;;  %vm1506_vm6 = vcmask 261312   ;;  %vm1718_vm7 = vcmask 523264   ;;  %s3042_s17 = sld [smem:[#allocation31_spill]] }
  0x73   : > { %2060 = vmatprep.subr.mxu1 %v2509_v0  ;;  %2082 = vmatprep.subr.mxu0 %v2509_v0  ;;  %s570_s28 = scalar_lea.vmem [#allocation16], %s2738_s13  ;;  %s3045_s26 = sld [smem:[#allocation34_spill]] }
  0x74   : > { %2061 = vmatpush3.msra.mxu1 %v574_v3  ;;  %2083 = vmatpush3.msra.mxu0 %v732_v13  ;;  %s1840_s21 = sshll.u32 %s570_s28, 4  ;;  %s1826_s18 = scalar_lea.sflag [#allocation10], %s2735_s6  ;;  %s1841_s21 = int_to_ptr.vmem [resolvable:$true] %s1840_s21 }
  0x75   : > { %2062 = vmatprep.subr.mxu1 %v2509_v0  ;;  %2084 = vmatprep.subr.mxu0 %v2509_v0  ;;  %s2406_s20 = scalar_lea.vmem %s1841_s21, 128 }
  0x76   : > { %2063 = vmatpush3.msra.mxu1 %v573_v4  ;;  %2085 = vmatpush3.msra.mxu0 %v731_v14  ;;  %v809_v32 = vstv %s806_s2  ;;  %p2407_p4 = scmp.ne.s32.totalorder %s1841_s21, %s2406_s20 }
  0x77   : > { %2065 = vmatmul.mubr.msk.f32.vlgmr.msra.gmra.mxu1 %vm577_vm1, %v2780_v5  ;;  %2067 = vmatprep.subr.mxu1 %v2509_v0  ;;  %vm810_vm3 = vcmp.lt.s32.totalorder %v808_v31, %v809_v32  ;;  %v1509_v31 = vld [vmem:[#allocation13] sm:$0xff] }
  0x78   : > { %2068 = vmatpush3.msra.mxu1 %v656_v6  ;;  %2075 = vmatprep.mubr.msk.f32.mxu1 %vm2510_vm0, %v2509_v0  ;;  %v811_v35 = vsel %vm810_vm3, 0.0, %v2514_v34  ;;  %p2408_p3 = pnand %p2407_p4, %p2693_p9 }
  0x79   : > { %2069 = vmatprep.subr.mxu1 %v2509_v0  ;;  %2087 = vmatmul.mubr.msk.f32.vlgmr.msra.gmra.mxu0 %vm577_vm1, %v572_v10 }
  0x7a   : > { %2070 = vmatpush3.msra.mxu1 %v655_v7  ;;  %2099 = vmatprep.subr.mxu0 %v2509_v0  ;;  %p2409_p7 = pneg %p2408_p3 }
  0x7b   : > { %2071 = vmatprep.subr.mxu1 %v2509_v0  ;;  %2101 = vmatprep.mubr.msk.f32.mxu0 %vm2510_vm0, %v2509_v0 }
  0x7c   : > { %2072 = vmatpush3.msra.mxu1 %v654_v8 }
  0x7d   : > { %2073 = vmatprep.subr.mxu1 %v2509_v0 }
  0x7e   : > { %2074 = vmatpush3.msra.mxu1 %v653_v9 }
  0x7f   : > { %2076 = vmatmul.mubr.msk.f32.vlgmr.msra.gmra.mxu1 %vm577_vm1, %v572_v10  ;;  %2089 = vmatprep.subr.mxu1 %v2509_v0 }
  0x80   : > { %2091 = vmatprep.mubr.msk.f32.mxu1 %vm2510_vm0, %v2509_v0 }
 0x137   : > { %v647_v15 = vpop.f32.mrf.mxu1 }
 0x138   : > { %v651_v16 = vmul.f32 0.35355338, %v647_v15 }
 0x139   : > { %v2066_v17 = vpop.f32.mrf.mxu1  ;;  %v801_v22 = vpop.f32.mrf.mxu0 }
 0x13a   : > { %652 = vst.msk [vmem:[#allocation2] sm:$0xff] %vm577_vm1, %v651_v16  ;;  %805 = vst.msk [vmem:[#allocation4] sm:$0xff] %vm577_vm1, %v801_v22 }
 0x13b   : > { %v2088_v23 = vpop.f32.mrf.mxu0 }
 0x13f   : > { %v726_v18 = vpop.f32.mrf.mxu1 }
 0x140   : > { %730 = vst.msk [vmem:[#allocation3] sm:$0xff] %vm577_vm1, %v726_v18 }
 0x141   : > { %v2077_v19 = vpop.f32.mrf.mxu1  ;;  %v812_v21 = vld [vmem:[#allocation2] sm:$0xff]  ;;  %v814_v33 = vld [vmem:[#allocation4] sm:$0xff] }
 0x147   : > { %v1155_v20 = vld [vmem:[#allocation3] sm:$0xff] }
 0x148   : > { %1161 = vrot.lane.b32.xlu1 %v1155_v20, %s2511_s1  ;;  %984 = vrot.lane.b32.xlu0 %v1155_v20, %s2512_s19 }
 0x149   : > { %2090 = vmatpush3.xpose.msk.msra.mxu1 %vm815_vm2, %v1155_v20 }
 0x14a   : > { %2094 = vmatprep.subr.mxu1 %v2509_v0 }
 0x14c   : > { %2092 = vmatmul.mubr.msk.f32.vlgmr.msra.gmra.mxu1 %vm815_vm2, %v812_v21  ;;  %1158 = vrot.lane.b32.xlu1 %v812_v21, %s2511_s1 }
 0x14d   : > { %981 = vrot.lane.b32.xlu0 %v812_v21, %s2512_s19  ;;  %2096 = vmatprep.mubr.msk.f32.mxu1 %vm2510_vm0, %v2509_v0 }
 0x14e   : > { %2095 = vmatpush3.msra.mxu1 %v814_v33 }
 0x14f   : > { %2104 = vmatprep.subr.mxu1 %v2509_v0 }
 0x150   : > { %1335 = vrot.lane.b32.xlu1 %v812_v21, %s2513_s9 }
 0x151   : > { %1338 = vrot.lane.b32.xlu0 %v1155_v20, %s2513_s9 }
 0x1ba   : > { %v985_v24 = vpop.permute.xlu0 %984  ;;  %v1162_v25 = vpop.permute.xlu1 %1161 }
 0x1bb   : > { %2100 = vmatpush3.xpose.msk.msra.mxu0 %vm815_vm2, %v985_v24 }
 0x1bc   : > { %2109 = vmatprep.subr.mxu0 %v2509_v0 }
 0x1be   : > { %v1159_v27 = vpop.permute.xlu1 %1158 }
 0x1bf   : > { %v982_v26 = vpop.permute.xlu0 %981 }
 0x1c0   : > { %2102 = vmatmul.mubr.msk.f32.vlgmr.msra.gmra.mxu0 %vm815_vm2, %v982_v26 }
 0x1c1   : > { %2110 = vmatpush3.xpose.msk.msra.mxu0 %vm815_vm2, %v1162_v25  ;;  %2111 = vmatprep.mubr.msk.f32.mxu0 %vm2510_vm0, %v2509_v0 }
 0x1c2   : > { %2119 = vmatprep.subr.mxu0 %v2509_v0  ;;  %v1336_v29 = vpop.permute.xlu1 %1335 }
 0x1c3   : > { %v1339_v28 = vpop.permute.xlu0 %1338 }
 0x1c4   : > { %2112 = vmatmul.mubr.msk.f32.vlgmr.msra.gmra.mxu0 %vm815_vm2, %v1159_v27  ;;  %v1512_v27 = vld [vmem:[#allocation13 + $0x18] sm:$0xff] }
 0x1c5   : > { %2120 = vmatpush3.xpose.msk.msra.mxu0 %vm815_vm2, %v1339_v28  ;;  %2121 = vmatprep.mubr.msk.f32.mxu0 %vm2510_vm0, %v2509_v0  ;;  %v1511_v28 = vld [vmem:[#allocation13 + $0x10] sm:$0xff] }
 0x1c6   : > { %2129 = vmatprep.subr.mxu0 %v2509_v0 }
 0x1c8   : > { %2122 = vmatmul.mubr.msk.f32.vlgmr.msra.gmra.mxu0 %vm815_vm2, %v1336_v29  ;;  %v1510_v29 = vld [vmem:[#allocation13 + $0x8] sm:$0xff] }
 0x1c9   : > { %2137 = vmatprep.mubr.msk.f32.mxu0 %vm2510_vm0, %v2509_v0  ;;  %2130 = vmatpush3.msra.mxu0 %v1512_v27 }
 0x1ca   : > { %2131 = vmatprep.subr.mxu0 %v2509_v0 }
 0x1cb   : > { %2132 = vmatpush3.msra.mxu0 %v1511_v28 }
 0x1cc   : > { %2133 = vmatprep.subr.mxu0 %v2509_v0 }
 0x1cd   : > { %2134 = vmatpush3.msra.mxu0 %v1510_v29 }
 0x1ce   : > { %2135 = vmatprep.subr.mxu0 %v2509_v0 }
 0x1cf   : > { %2136 = vmatpush3.msra.mxu0 %v1509_v31 }
 0x1d0   : > { %2151 = vmatprep.subr.mxu0 %v2509_v0 }
 0x20c   : > { %v888_v36 = vpop.f32.mrf.mxu1 }
 0x20d   : > { %v889_v37 = vadd.f32 %v888_v36, %v811_v35 }
 0x20e   : > { %v2093_v38 = vpop.f32.mrf.mxu1 }
 0x20f   : > { %v892_v39 = vsel %vm815_vm2, %v889_v37, -inf }
 0x210   : > { %893 = vmax.xlane.f32.xlu0 %v892_v39 }
 0x280   : > { %v1056_v40 = vpop.f32.mrf.mxu0 }
 0x281   : > { %v1057_v41 = vadd.f32 %v1056_v40, %v811_v35 }
 0x282   : > { %v2103_v42 = vpop.f32.mrf.mxu0 }
 0x283   : > { %v1060_v43 = vsel %vm815_vm2, %v1057_v41, -inf }
 0x284   : > { %1061 = vmax.xlane.f32.xlu1 %v1060_v43  ;;  %v1233_v44 = vpop.f32.mrf.mxu0 }
 0x285   : > { %v1234_v45 = vadd.f32 %v1233_v44, %v811_v35 }
 0x286   : > { %v2113_v46 = vpop.f32.mrf.mxu0 }
 0x287   : > { %v1237_v47 = vsel %vm815_vm2, %v1234_v45, -inf }
 0x288   : > { %v1410_v48 = vpop.f32.mrf.mxu0  ;;  %1238 = vmax.xlane.f32.xlu0 %v1237_v47  ;;  %v1621_v47 = vld [vmem:[#allocation14 + $0x18] sm:$0xff] }
 0x289   : > { %v1411_v49 = vadd.f32 %v1410_v48, %v811_v35  ;;  %v1620_v48 = vld [vmem:[#allocation14 + $0x10] sm:$0xff] }
 0x28a   : > { %v2123_v50 = vpop.f32.mrf.mxu0 }
 0x28b   : > { %v1414_v51 = vsel %vm815_vm2, %v1411_v49, -inf  ;;  %v1618_v50 = vld [vmem:[#allocation14] sm:$0xff] }
 0x28c   : > { %1415 = vmax.xlane.f32.xlu0 %v1414_v51  ;;  %v1709_v51 = vld [vmem:[%s3004_s11 + $0x30] sm:$0xff] }
 0x295   : > { %1072 = vrot.lane.b32.xlu1 %v814_v33, %s2512_s19 }
 0x299   : > { %v894_v52 = vpop.xlane.xlu0 %893 }
 0x29a   : > { %v895_v53 = vsub.f32 %v889_v37, %v894_v52  ;;  %v1708_v52 = vld [vmem:[%s3004_s11 + $0x28] sm:$0xff] }
 0x29c   : > { %v896_v54 = vmul.f32 1.442695, %v895_v53  ;;  %v1707_v53 = vld [vmem:[%s3004_s11 + $0x20] sm:$0xff] }
 0x29e   : > { %2270 = vpow2.f32 %v896_v54  ;;  %v1706_v54 = vld [vmem:[%s3004_s11 + $0x18] sm:$0xff] }
 0x2ab   : > { %v2271_v55 = vpop.eup %2270 }
 0x2ac   : > { %v898_v56 = vsel %vm815_vm2, %v2271_v55, 0.0 }
 0x2b9   : > { %899 = vadd.xlane.f32.xlu1 %v898_v56 }
 0x30d   : > { %v1062_v57 = vpop.xlane.xlu1 %1061 }
 0x30e   : > { %v1063_v58 = vsub.f32 %v1057_v41, %v1062_v57 }
 0x310   : > { %v1064_v59 = vmul.f32 1.442695, %v1063_v58 }
 0x311   : > { %v1239_v60 = vpop.xlane.xlu0 %1238  ;;  %v1073_v10 = vpop.permute.xlu1 %1072 }
 0x312   : > { %2272 = vpow2.f32 %v1064_v59  ;;  %v1240_v61 = vsub.f32 %v1234_v45, %v1239_v60 }
 0x314   : > { %v1241_v62 = vmul.f32 1.442695, %v1240_v61 }
 0x315   : > { %v1416_v63 = vpop.xlane.xlu0 %1415 }
 0x316   : > { %2274 = vpow2.f32 %v1241_v62  ;;  %v1417_v1 = vsub.f32 %v1411_v49, %v1416_v63  ;;  %v1619_v49 = vld [vmem:[#allocation14 + $0x8] sm:$0xff] }
 0x318   : > { %v1418_v2 = vmul.f32 1.442695, %v1417_v1  ;;  %v1994_v1 = vld [vmem:[%s3000_s7] ss:$0 sm:$0xff] }
 0x31a   : > { %2276 = vpow2.f32 %v1418_v2 }
 0x31f   : > { %v2273_v3 = vpop.eup %2272 }
 0x320   : > { %v1066_v4 = vsel %vm815_vm2, %v2273_v3, 0.0 }
 0x321   : > { %1067 = vadd.xlane.f32.xlu0 %v1066_v4 }
 0x323   : > { %v2275_v6 = vpop.eup %2274 }
 0x324   : > { %v1243_v7 = vsel %vm815_vm2, %v2275_v6, 0.0 }
 0x325   : > { %1244 = vadd.xlane.f32.xlu1 %v1243_v7  ;;  %v1705_v7 = vld [vmem:[%s3004_s11 + $0x10] sm:$0xff] }
 0x327   : > { %v2277_v8 = vpop.eup %2276 }
 0x328   : > { %v1420_v9 = vsel %vm815_vm2, %v2277_v8, 0.0 }
 0x329   : > { %1421 = vadd.xlane.f32.xlu0 %v1420_v9  ;;  %v1703_v9 = vld [vmem:[%s3004_s11] sm:$0xff] }
 0x336   : > { %1426 = vrot.lane.b32.xlu1 %v814_v33, %s2513_s9  ;;  %s3043_s9 = sld [smem:[#allocation32_spill]] }
 0x33c   : > { %v2000_v31 = vld [vmem:[%s3043_s9] ss:$0 sm:$0xff] }
 0x33f   : > { %1249 = vrot.lane.b32.xlu0 %v814_v33, %s2511_s1 }
 0x342   : > { %v900_v11 = vpop.xlane.xlu1 %899 }
 0x343   : > { %2278 = vrcp.f32 %v900_v11 }
 0x350   : > { %v2279_v12 = vpop.eup %2278 }
 0x351   : > { %v902_v13 = vmul.f32 %v2279_v12, %v2271_v55 }
 0x353   : > { %2097 = vmatmul.mubr.msk.f32.vlgmr.msra.gmra.mxu1 %vm815_vm2, %v902_v13 }
 0x354   : > { %2105 = vmatpush3.msra.mxu1 %v1073_v10  ;;  %2106 = vmatprep.mubr.msk.f32.mxu1 %vm2510_vm0, %v2509_v0  ;;  %v1996_v10 = vld [vmem:[%s3003_s10] ss:$0 sm:$0xff] }
 0x355   : > { %2114 = vmatprep.subr.mxu1 %v2509_v0 }
 0x3aa   : > { %v1068_v14 = vpop.xlane.xlu0 %1067 }
 0x3ab   : > { %2280 = vrcp.f32 %v1068_v14 }
 0x3ae   : > { %v1245_v15 = vpop.xlane.xlu1 %1244 }
 0x3af   : > { %2282 = vrcp.f32 %v1245_v15  ;;  %v1998_v15 = vld [vmem:[%s3042_s17] ss:$0 sm:$0xff]  ;;  %s2518_s17 = smov [#allocation16]  }
 0x3b0   : > { %s2410_s1 = sshll.u32 %s2518_s17, 4  ;;  %s2411_s1 = int_to_ptr.vmem [resolvable:$false] %s2410_s1 }
 0x3b1   : > { %p2413_p13 = scmp.lt.s32.totalorder %s1841_s21, %s2411_s1 }
 0x3b2   : > { %v1422_v16 = vpop.xlane.xlu0 %1421  ;;  %v1427_v22 = vpop.permute.xlu1 %1426 }
 0x3b3   : > { %2284 = vrcp.f32 %v1422_v16 }
 0x3b6   : > { %v1250_v19 = vpop.permute.xlu0 %1249 }
 0x3b8   : > { %v2281_v17 = vpop.eup %2280 }
 0x3b9   : > { %v1070_v18 = vmul.f32 %v2281_v17, %v2273_v3  ;;  %v1995_v3 = vld [vmem:[%s3001_s8] ss:$0 sm:$0xff] }
 0x3bb   : > { %2107 = vmatmul.mubr.msk.f32.vlgmr.msra.gmra.mxu1 %vm815_vm2, %v1070_v18 }
 0x3bc   : > { %v2283_v20 = vpop.eup %2282  ;;  %2115 = vmatpush3.msra.mxu1 %v1250_v19  ;;  %2116 = vmatprep.mubr.msk.f32.mxu1 %vm2510_vm0, %v2509_v0 }
 0x3bd   : > { %2124 = vmatprep.subr.mxu1 %v2509_v0  ;;  %v1247_v21 = vmul.f32 %v2283_v20, %v2275_v6 }
 0x3bf   : > { %2117 = vmatmul.mubr.msk.f32.vlgmr.msra.gmra.mxu1 %vm815_vm2, %v1247_v21 }
 0x3c0   : > { %v2285_v23 = vpop.eup %2284  ;;  %2125 = vmatpush3.msra.mxu1 %v1427_v22  ;;  %2126 = vmatprep.mubr.msk.f32.mxu1 %vm2510_vm0, %v2509_v0 }
 0x3c1   : > { %v1424_v24 = vmul.f32 %v2285_v23, %v2277_v8  ;;  %2140 = vmatprep.subr.mxu1 %v2509_v0  ;;  %v1704_v8 = vld [vmem:[%s3004_s11 + $0x8] sm:$0xff] }
 0x3c3   : > { %2127 = vmatmul.mubr.msk.f32.vlgmr.msra.gmra.mxu1 %vm815_vm2, %v1424_v24 }
 0x3c4   : > { %2148 = vmatprep.mubr.msk.f32.mxu1 %vm2510_vm0, %v2509_v0  ;;  %2141 = vmatpush3.msra.mxu1 %v1621_v47 }
 0x3c5   : > { %2142 = vmatprep.subr.mxu1 %v2509_v0 }
 0x3c6   : > { %2143 = vmatpush3.msra.mxu1 %v1620_v48 }
 0x3c7   : > { %2144 = vmatprep.subr.mxu1 %v2509_v0 }
 0x3c8   : > { %2145 = vmatpush3.msra.mxu1 %v1619_v49 }
 0x3c9   : > { %2146 = vmatprep.subr.mxu1 %v2509_v0 }
 0x3ca   : > { %2147 = vmatpush3.msra.mxu1 %v1618_v50 }
 0x413   : > { %v972_v25 = vpop.f32.mrf.mxu1 }
 0x414   : > { %976 = vst.msk [vmem:[#allocation5] sm:$0xff] %vm815_vm2, %v972_v25 }
 0x415   : > { %v2098_v26 = vpop.f32.mrf.mxu1 }
 0x47b   : > { %v1144_v30 = vpop.f32.mrf.mxu1 }
 0x47c   : > { %1149 = vrot.lane.b32.xlu1 %v1144_v30, %s2515_s29 }
 0x47d   : > { %v2108_v32 = vpop.f32.mrf.mxu1 }
 0x47f   : > { %v1321_v33 = vpop.f32.mrf.mxu1 }
 0x480   : > { %1326 = vrot.lane.b32.xlu0 %v1321_v33, %s2516_s12  ;;  %s3044_s12 = sld [smem:[#allocation33_spill]] }
 0x481   : > { %v2118_v34 = vpop.f32.mrf.mxu1 }
 0x483   : > { %v1498_v35 = vpop.f32.mrf.mxu1 }
 0x484   : > { %1503 = vrot.lane.b32.xlu1 %v1498_v35, %s2517_s25  ;;  %s2003_s25 = sshll.u32 %s2492_s24, 7  ;;  %s2412_s24 = scalar_lea.vmem %s2411_s1, 256 }
 0x485   : > { %v2128_v36 = vpop.f32.mrf.mxu1  ;;  %s1838_s30 = scalar_lea.hbm %s3045_s26, %s2003_s25  ;;  %p2414_p5 = scmp.lt.s32.totalorder %s2412_s24, %s2406_s20 }
 0x486   : > { %v2001_v33 = vld [vmem:[%s3044_s12] ss:$0 sm:$0xff] }
 0x487   : > { %p2415_p10 = por %p2414_p5, %p2413_p13 }
 0x489   : > { %p2416_p1 = pnand %p2415_p10, %p2409_p7 }
 0x4ee   : > { %v1150_v37 = vpop.permute.xlu1 %1149 }
 0x4ef   : > { %1153 = vst.msk [vmem:[#allocation5] sm:$0xff] %vm1152_vm4, %v1150_v37 }
 0x4f2   : > { %v1327_v38 = vpop.permute.xlu0 %1326 }
 0x4f3   : > { %1330 = vst.msk [vmem:[#allocation5] sm:$0xff] %vm1329_vm5, %v1327_v38 }
 0x4f6   : > { %v1504_v39 = vpop.permute.xlu1 %1503 }
 0x4f7   : > { %1507 = vst.msk [vmem:[#allocation5] sm:$0xff] %vm1506_vm6, %v1504_v39 }
 0x4fe   : > { %v1508_v40 = vld [vmem:[#allocation5] sm:$0xff] }
 0x4ff   : > { %2138 = vmatmul.mubr.msk.f32.vlgmr.msra.gmra.mxu0 %vm577_vm1, %v1508_v40 }
 0x500   : > { %2167 = vmatprep.mubr.msk.f32.mxu0 %vm2510_vm0, %v2509_v0 }
 0x5bf   : > { %v1582_v41 = vpop.f32.mrf.mxu0 }
 0x5c0   : > { %v1583_v42 = vadd.f32 %v1582_v41, %v2780_v5  ;;  %v1710_v5 = vld [vmem:[%s3004_s11 + $0x38] sm:$0xff] }
 0x5c1   : > { %v2139_v43 = vpop.f32.mrf.mxu0  ;;  %2152 = vmatpush3.msra.mxu0 %v1710_v5 }
 0x5c2   : > { %v1586_v44 = vsel %vm577_vm1, %v1583_v42, 0.0  ;;  %v1591_v45 = vmul.f32 %v1583_v42, %v1583_v42  ;;  %2153 = vmatprep.subr.mxu0 %v2509_v0 }
 0x5c3   : > { %1587 = vadd.xlane.f32.xlu0 %v1586_v44  ;;  %2154 = vmatpush3.msra.mxu0 %v1709_v51 }
 0x5c4   : > { %v1592_v46 = vsel %vm577_vm1, %v1591_v45, 0.0  ;;  %2155 = vmatprep.subr.mxu0 %v2509_v0 }
 0x5c5   : > { %1593 = vadd.xlane.f32.xlu1 %v1592_v46  ;;  %2156 = vmatpush3.msra.mxu0 %v1708_v52 }
 0x5c6   : > { %2157 = vmatprep.subr.mxu0 %v2509_v0 }
 0x5c7   : > { %2158 = vmatpush3.msra.mxu0 %v1707_v53 }
 0x5c8   : > { %2159 = vmatprep.subr.mxu0 %v2509_v0 }
 0x5c9   : > { %2160 = vmatpush3.msra.mxu0 %v1706_v54 }
 0x5ca   : > { %2161 = vmatprep.subr.mxu0 %v2509_v0 }
 0x5cb   : > { %2162 = vmatpush3.msra.mxu0 %v1705_v7 }
 0x5cc   : > { %2163 = vmatprep.subr.mxu0 %v2509_v0 }
 0x5cd   : > { %2164 = vmatpush3.msra.mxu0 %v1704_v8 }
 0x5ce   : > { %2165 = vmatprep.subr.mxu0 %v2509_v0 }
 0x5cf   : > { %2166 = vmatpush3.msra.mxu0 %v1703_v9 }
 0x64c   : > { %v1588_v55 = vpop.xlane.xlu0 %1587 }
 0x64d   : > { %v1590_v56 = vmul.f32 0.03125, %v1588_v55 }
 0x64e   : > { %v1594_v57 = vpop.xlane.xlu1 %1593 }
 0x64f   : > { %v1596_v58 = vmul.f32 %v1590_v56, %v1590_v56  ;;  %v1595_v59 = vmul.f32 0.03125, %v1594_v57  ;;  %v1600_v62 = vsub.f32 %v1583_v42, %v1590_v56 }
 0x651   : > { %v1597_v60 = vsub.f32 %v1595_v59, %v1596_v58 }
 0x653   : > { %v1598_v61 = vadd.f32 1e-05, %v1597_v60 }
 0x655   : > { %2286 = vrsqrt.f32 %v1598_v61 }
 0x662   : > { %v2287_v63 = vpop.eup %2286 }
 0x663   : > { %v1601_v2 = vmul.f32 %v2287_v63, %v1600_v62 }
 0x665   : > { %v1609_v4 = vmul.f32 %v1994_v1, %v1601_v2 }
 0x667   : > { %v1617_v6 = vadd.f32 %v1995_v3, %v1609_v4 }
 0x669   : > { %2149 = vmatmul.mubr.msk.f32.vlgmr.msra.gmra.mxu1 %vm577_vm1, %v1617_v6 }
 0x729   : > { %v1698_v11 = vpop.f32.mrf.mxu1 }
 0x72a   : > { %v1699_v12 = vadd.f32 %v1996_v10, %v1698_v11 }
 0x72b   : > { %v2150_v13 = vpop.f32.mrf.mxu1 }
 0x72c   : > { %v1702_v14 = vmax.f32 %v1699_v12, 0.0 }
 0x72e   : > { %2168 = vmatmul.mubr.msk.f32.vlgmr.msra.gmra.mxu0 %vm1718_vm7, %v1702_v14 }
 0x7ee   : > { %v1788_v16 = vpop.f32.mrf.mxu0 }
 0x7ef   : > { %v1789_v17 = vadd.f32 %v1998_v15, %v1788_v16 }
 0x7f0   : > { %v2169_v18 = vpop.f32.mrf.mxu0 }
 0x7f1   : > { %v1792_v19 = vadd.f32 %v1789_v17, %v1617_v6 }
 0x7f3   : > { %v1793_v0 = vsel %vm577_vm1, %v1792_v19, 0.0  ;;  %v1797_v20 = vmul.f32 %v1792_v19, %v1792_v19 }
 0x7f4   : > { %1794 = vadd.xlane.f32.xlu0 %v1793_v0 }
 0x7f5   : > { %v1798_v21 = vsel %vm577_vm1, %v1797_v20, 0.0 }
 0x7f8   : > { %1799 = vadd.xlane.f32.xlu0 %v1798_v21 }
 0x87d   : > { %v1795_v22 = vpop.xlane.xlu0 %1794 }
 0x87e   : > { %v1796_v23 = vmul.f32 0.03125, %v1795_v22 }
 0x880   : > { %v1802_v25 = vmul.f32 %v1796_v23, %v1796_v23  ;;  %v1806_v29 = vsub.f32 %v1792_v19, %v1796_v23 }
 0x881   : > { %v1800_v24 = vpop.xlane.xlu0 %1799 }
 0x882   : > { %v1801_v26 = vmul.f32 0.03125, %v1800_v24 }
 0x884   : > { %v1803_v27 = vsub.f32 %v1801_v26, %v1802_v25 }
 0x886   : > { %v1804_v28 = vadd.f32 1e-05, %v1803_v27 }
 0x888   : > { %2288 = vrsqrt.f32 %v1804_v28 }
 0x895   : > { %v2289_v30 = vpop.eup %2288 }
 0x896   : > { %v1807_v32 = vmul.f32 %v2289_v30, %v1806_v29 }
 0x898   : > { %v1815_v34 = vmul.f32 %v2000_v31, %v1807_v32 }
 0x89a   : > { %v1823_v35 = vadd.f32 %v2001_v33, %v1815_v34 }
 0x89c   : > { %1824 = vst.msk [vmem:[%s570_s28] sm:$0xff] %vm577_vm1, %v1823_v35 }
 0x89d   : > { %2419 = shalt.err (!%p2416_p1)
}
 0x89e   : > { %s2420_s13 = scalar_lea.hbm %s1838_s30, 128  ;;  %s2424_s9 = scalar_lea.hbm %s3045_s26, 256 }
 0x89f   : > { %p2421_p2 = scmp.ne.s32.totalorder %s1838_s30, %s2420_s13  ;;  %p2425_p11 = scmp.lt.s32.totalorder %s1838_s30, %s3045_s26 }
 0x8a0   : > { %p2426_p0 = scmp.lt.s32.totalorder %s2424_s9, %s2420_s13 }
 0x8a1   : > { %p2422_p6 = pnand %p2421_p2, %p2693_p9 }
 0x8a2   : > { %p2427_p12 = por %p2426_p0, %p2425_p11 }
 0x8a3   : > { %p2423_p8 = pneg %p2422_p6 }
 0x8a5   : > { %p2428_p4 = pnand %p2427_p12, %p2423_p8 }
 0x8a7   : > { %2431 = shalt.err (!%p2428_p4)
}
 0x8a8   : > { %2182 = dma.vmem_to_hbm [thread:$0]  (%p2693_p9), %s1841_s21, 128, %s1838_s30, %s1826_s18  }
 0x8a9 PF: > { %s3046_s12 = sld [smem:[#allocation23_spill]]  ;;  %p3049_p7 = scmp.ge.s32.totalorder %s2500_s0, 2 }
 0x8aa   : > { %s3047_s25 = sld [smem:[#allocation25_spill]] }
 0x8af   : > { %s1852_s28 = sand.u32 1, %s3046_s12  }
 0x8b0   : > { %p3048_p3 = scmp.ne.s32.totalorder %s3047_s25, 0  ;;  %s1853_s27 = scalar_lea.sflag [#allocation10], %s1852_s28 }
 0x8b2   : > { %p2199_p13 = pnand %p3049_p7, %p3048_p3 }
 0x8b4   : > { %p2200_p5 = pneg %p2199_p13 }
 0x8b6   : > { %2475 = dma.done.wait (%p2200_p5), %s1853_s27, 128  }
 0x8b7   : > { %2477 = vsyncadd (%p2200_p5), %s1853_s27, 4294967168  ;;  %s39_s0 = sadd.s32 1, %s2500_s0   ;;  %s3050_s24 = sld [smem:[#allocation24_spill]] }
 0x8b8   : > { %p36_p10 = scmp.ge.s32.totalorder %s39_s0, 4   ;;  %s3051_s25 = sld [smem:[#allocation26_spill]] }
 0x8b9   : > { %s3052_s21 = smov %s2484_s22  ;;  %s3053_s22 = smov %s2488_s23 }
 0x8ba   : > { %s3054_s23 = smov %s2702_s16  ;;  %38 = sbr.rel (!%p36_p10) target bundleno = 22 (0x16), region = 142 }
 0x8bf   :  { %1858 = vsyncpa [#allocation9], 1 }
 0x8c0   :  { %1860 = vsyncpa [#allocation9 + $0x1], 1 }
 0x8c1   :  { %1861 = vsyncpa [#allocation12], 1 }
 0x8c2   :  { %1863 = vsyncpa [#allocation12 + $0x1], 1 }
 0x8c3   :  { %1864 = vsyncpa [#allocation15], 1 }
 0x8c4   :  { %1865 = vsyncpa [#allocation10], 1 }
 0x8c5   :  { %1867 = vsyncpa [#allocation10 + $0x1], 1 }

// kernel: tpu_custom_call.1
= control target key start
LH: loop header
LB: loop body
LE: loop exit
PB: predicated region body
PF: predicated region fallthrough
CT: control target
= control target key end

     0   :  { %s2502_s18 = smov [#allocation7]   ;;  %s2993_s0 = inlined_call_operand.hbm [shape: s32[2], index: 0, kind: input, shape index: {}]   ;;  %s2994_s1 = inlined_call_operand.hbm [shape: f32[2,8,32], index: 1, kind: input, shape index: {}]   ;;  %s2995_s2 = inlined_call_operand.hbm [shape: f32[2,8,32], index: 2, kind: input, shape index: {}]   ;;  %s2996_s3 = inlined_call_operand.vmem [shape: f32[32,32], index: 3, kind: input, shape index: {}]   ;;  %s2997_s4 = inlined_call_operand.vmem [shape: f32[32,32], index: 4, kind: input, shape index: {}]   ;;  %s2998_s5 = inlined_call_operand.vmem [shape: f32[32,32], index: 5, kind: input, shape index: {}]   ;;  %s2999_s6 = inlined_call_operand.hbm [shape: f32[32,32], index: 6, kind: input, shape index: {}]   ;;  %s3000_s7 = inlined_call_operand.vmem [shape: f32[1,32], index: 7, kind: input, shape index: {}]   ;;  %s3001_s8 = inlined_call_operand.vmem [shape: f32[1,32], index: 8, kind: input, shape index: {}]   ;;  %s3002_s9 = inlined_call_operand.hbm [shape: f32[32,64], index: 9, kind: input, shape index: {}]   ;;  %s3003_s10 = inlined_call_operand.vmem [shape: f32[1,64], index: 10, kind: input, shape index: {}]   ;;  %s3004_s11 = inlined_call_operand.vmem [shape: f32[64,32], index: 11, kind: input, shape index: {}]   ;;  %s3005_s12 = inlined_call_operand.vmem [shape: f32[1,32], index: 12, kind: input, shape index: {}]   ;;  %s3006_s13 = inlined_call_operand.vmem [shape: f32[1,32], index: 13, kind: input, shape index: {}]   ;;  %s3007_s14 = inlined_call_operand.vmem [shape: f32[1,32], index: 14, kind: input, shape index: {}]   ;;  %s3008_s15 = inlined_call_operand.hbm [shape: f32[2,8,32], index: 15, kind: output, shape index: {}]  }
   0x1   :  { %3015 = sst [smem:[#allocation27_spill]] %s2994_s1 }
   0x2   :  { %3016 = sst [smem:[#allocation28_spill]] %s2995_s2 }
   0x3   :  { %3017 = sst [smem:[#allocation29_spill]] %s2999_s6 }
   0x4   :  { %3018 = sst [smem:[#allocation30_spill]] %s3002_s9 }
   0x5   :  { %3019 = sst [smem:[#allocation31_spill]] %s3005_s12 }
   0x6   :  { %3020 = sst [smem:[#allocation32_spill]] %s3006_s13 }
   0x7   :  { %3021 = sst [smem:[#allocation33_spill]] %s3007_s14 }
   0x8   :  { %3022 = sst [smem:[#allocation34_spill]] %s3008_s15 }
   0x9   :  { %21 = dma.hbm_to_smem %s2993_s0, 16, %s2502_s18, [#allocation6] }
   0xa   :  { %2456 = dma.done.wait [#allocation6], 16 }
   0xb   :  { %2457 = vsyncadd [#allocation6], 4294967280 }
   0xc   :  { %23 = sfence }
   0xd   :  { %24 = vsyncpa [#allocation9], 0 }
   0xe   :  { %26 = vsyncpa [#allocation9 + $0x1], 0 }
   0xf   :  { %27 = vsyncpa [#allocation12], 0 }
  0x10   :  { %29 = vsyncpa [#allocation12 + $0x1], 0 }
  0x11   :  { %30 = vsyncpa [#allocation15], 0 }
  0x12   :  { %31 = vsyncpa [#allocation10], 0 }
  0x13   :  { %33 = vsyncpa [#allocation10 + $0x1], 0  ;;  %s2602_s21 = smov 0   ;;  %s2604_s22 = smov 0  }
  0x14   :  { %s2606_s23 = smov 0   ;;  %s2608_s24 = smov 0  }
  0x15   :  { %s2610_s25 = smov 0   ;;  %s2612_s0 = smov 0  }
  0x16 LB: > { %3023 = sst [smem:[#allocation23_spill]] %s2480_s21  ;;  %s2633_s26 = sadd.s32 4294967295, %s2500_s0   ;;  %s2500_s0 = sphi %s2612_s0, %s39_s0   ;;  %s2496_s25 = sphi %s2610_s25, %s3051_s25   ;;  %s2492_s24 = sphi %s2608_s24, %s3050_s24   ;;  %s2488_s23 = sphi %s2606_s23, %s3054_s23   ;;  %s2484_s22 = sphi %s2604_s22, %s3053_s22   ;;  %s2480_s21 = sphi %s2602_s21, %s3052_s21  }
  0x17   : > { %3024 = sst [smem:[#allocation24_spill]] %s2496_s25  ;;  %s1963_s27 = sadd.s32 4294967294, %s2500_s0  }
  0x18   : > { %p73_p0 = scmp.ne.s32.totalorder %s2484_s22, %s2480_s21  ;;  %p3012_p1 = scmp.eq.s32.totalorder %s2633_s26, 0 }
  0x19   : > { %p383_p3 = scmp.eq.s32.totalorder %s1963_s27, 1  ;;  %p1964_p5 = scmp.ge.s32.totalorder %s2500_s0, 1 }
  0x1a   : > { %p2642_p4 = por %p3012_p1, %p73_p0  ;;  %p390_p7 = scmp.lt.s32.totalorder %s2500_s0, 3 }
  0x1b   : > { %p2647_p6 = por %p383_p3, %p73_p0  ;;  %s2503_s16 = smov [#allocation13]  }
  0x1c   : > { %p2652_p8 = pnand %p1964_p5, %p390_p7  ;;  %s411_s17 = sshll.u32 %s2503_s16, 4  ;;  %s412_s17 = int_to_ptr.vmem [resolvable:$true] %s411_s17 }
  0x1d   : > { %s3026_s29 = scalar_select %p2647_p6, 1, 0 }
  0x1e   : > { %p2184_p9 = pneg %p2652_p8  ;;  %s2504_s19 = smov [#allocation14]  }
  0x1f   : > { %3027 = sst [smem:[#allocation25_spill]] %s3026_s29  ;;  %s430_s20 = sshll.u32 %s2504_s19, 4  ;;  %s431_s20 = int_to_ptr.vmem [resolvable:$true] %s430_s20 }
  0x20   : > { %p2661_p11 = pnand %p2184_p9, %p3012_p1  ;;  %s2309_s27 = scalar_lea.vmem %s412_s17, 512 }
  0x21   : > { %p2310_p13 = scmp.ne.s32.totalorder %s412_s17, %s2309_s27  ;;  %p2317_p5 = scmp.lt.s32.totalorder %s412_s17, %s412_s17 }
  0x22   : > { %p2300_p12 = pneg %p2661_p11  ;;  %p2318_p7 = scmp.lt.s32.totalorder %s2309_s27, %s2309_s27 }
  0x24   : > { %p2312_p0 = pnand %p2310_p13, %p2300_p12  ;;  %p2319_p10 = por %p2318_p7, %p2317_p5 }
  0x26   : > { %p2313_p3 = pneg %p2312_p0 }
  0x28   : > { %p2320_p9 = pnand %p2319_p10, %p2313_p3 }
  0x2a   : > { %2323 = shalt.err (!%p2320_p9)
}
  0x2b   : > { %s2505_s16 = smov 128   ;;  %s2506_s29 = smov 8  }
  0x2c   : > { %s3030_s6 = sld [smem:[#allocation29_spill]]  ;;  %s2335_s15 = scalar_lea.vmem %s431_s20, 512 }
  0x2d   : > { %p2336_p1 = scmp.ne.s32.totalorder %s431_s20, %s2335_s15  ;;  %p2343_p2 = scmp.lt.s32.totalorder %s431_s20, %s431_s20 }
  0x2e   : > { %p2344_p6 = scmp.lt.s32.totalorder %s2335_s15, %s2335_s15 }
  0x2f   : > { %p2338_p13 = pnand %p2336_p1, %p2300_p12 }
  0x30   : > { %p2345_p5 = por %p2344_p6, %p2343_p2 }
  0x31   : > { %p2339_p0 = pneg %p2338_p13 }
  0x32   : > { %2187 = dma.hbm_to_vmem [thread:$0]  (!%p2661_p11), %s3030_s6, 512, %s412_s17, [#allocation12], %s2505_s16, %s2505_s16, %s2506_s29  }
  0x33   : > { %p2346_p10 = pnand %p2345_p5, %p2339_p0 }
  0x35   : > { %2349 = shalt.err (!%p2346_p10)
}
  0x36   : > { %s3031_s9 = sld [smem:[#allocation30_spill]]  ;;  %s51_s15 = sadd.s32 1, %s2496_s25 }
  0x37   : > { %s60_s21 = sadd.s32 1, %s2488_s23  ;;  %p53_p1 = scmp.ge.s32.totalorder %s51_s15, 2 }
  0x38   : > { %p67_p2 = scmp.ne.s32.totalorder %s2488_s23, %s2484_s22  ;;  %p68_p6 = scmp.eq.s32.totalorder %s2500_s0, 0 }
  0x39   : > { %p2204_p12 = scmp.lt.s32.totalorder %s2500_s0, 2  ;;  %s3056_s15 = smov (%p53_p1, %s51_s15), 0 }
  0x3a   : > { %3032 = sst [smem:[#allocation26_spill]] %s3056_s15  ;;  %p69_p3 = por %p68_p6, %p67_p2 }
  0x3b   : > { %p3033_p7 = scmp.eq.s32.totalorder %s2633_s26, 1  ;;  %s55_s17 = ssub.s32 %s2496_s25, %s3056_s15 }
  0x3c   : > { %2190 = dma.hbm_to_vmem [thread:$0]  (!%p2661_p11), %s3031_s9, 512, %s431_s20, [#allocation15], %s2505_s16, %s2505_s16, %s2506_s29  }
  0x3d   : > { %p2693_p9 = por %p3033_p7, %p67_p2  ;;  %s459_s18 = sand.u32 1, %s2488_s23  }
  0x3e   : > { %p58_p13 = scmp.eq.s32.totalorder %s55_s17, 0  ;;  %s1968_s29 = sshll.u32 %s459_s18, 3 }
  0x3f   : > { %s1969_s20 = sshll.u32 %s2496_s25, 7  ;;  %s3035_s1 = sld [smem:[#allocation27_spill]] }
  0x40   : > { %s2702_s16 = scalar_select %p58_p13, %s2488_s23, %s60_s21  }
  0x41   : > { %s463_s9 = scalar_lea.vmem [#allocation8], %s1968_s29  ;;  %p2709_p11 = pnand %p2204_p12, %p69_p3 }
  0x42   : > { %s471_s13 = sshll.u32 %s463_s9, 4  ;;  %s3037_s2 = sld [smem:[#allocation28_spill]]  ;;  %s472_s13 = int_to_ptr.vmem [resolvable:$true] %s471_s13 }
  0x43   : > { %s460_s21 = scalar_lea.sflag [#allocation9], %s459_s18  ;;  %p2352_p0 = pneg %p2709_p11 }
  0x44   : > { %s2363_s19 = scalar_lea.vmem %s472_s13, 128  ;;  %s2507_s9 = smov [#allocation8]  }
  0x45   : > { %s469_s6 = scalar_lea.hbm %s3035_s1, %s1969_s20  ;;  %p2364_p5 = scmp.ne.s32.totalorder %s472_s13, %s2363_s19 }
  0x46   : > { %s2368_s27 = sshll.u32 %s2507_s9, 4  ;;  %s2369_s27 = int_to_ptr.vmem [resolvable:$false] %s2368_s27 }
  0x47   : > { %p2366_p10 = pnand %p2364_p5, %p2352_p0  ;;  %s2370_s1 = scalar_lea.vmem %s2369_s27, 256 }
  0x48   : > { %s2716_s25 = scalar_lea.hbm %s3037_s2, %s1969_s20  ;;  %p2371_p2 = scmp.lt.s32.totalorder %s472_s13, %s2369_s27 }
  0x49   : > { %p2367_p1 = pneg %p2366_p10  ;;  %p2372_p6 = scmp.lt.s32.totalorder %s2370_s1, %s2363_s19 }
  0x4b   : > { %p2373_p12 = por %p2372_p6, %p2371_p2 }
  0x4d   : > { %p2374_p3 = pnand %p2373_p12, %p2367_p1 }
  0x4f   : > { %2377 = shalt.err (!%p2374_p3)
}
  0x50   : > { %2194 = dma.hbm_to_vmem [thread:$0]  (!%p2709_p11), %s469_s6, 128, %s472_s13, %s460_s21  }
  0x51   : > { %s478_s15 = sand.u32 1, %s2500_s0   ;;  %s482_s18 = scalar_lea.vmem [#allocation11], %s1968_s29 }
  0x52   : > { %s489_s20 = sshll.u32 %s482_s18, 4  ;;  %s479_s17 = scalar_lea.sflag [#allocation12], %s478_s15  ;;  %s490_s20 = int_to_ptr.vmem [resolvable:$true] %s489_s20 }
  0x53   : > { %s2391_s2 = scalar_lea.vmem %s490_s20, 128  ;;  %s2508_s1 = smov [#allocation11]  }
  0x54   : > { %p2392_p7 = scmp.ne.s32.totalorder %s490_s20, %s2391_s2  ;;  %s2396_s19 = sshll.u32 %s2508_s1, 4  ;;  %s2397_s19 = int_to_ptr.vmem [resolvable:$false] %s2396_s19 }
  0x55   : > { %s2398_s9 = scalar_lea.vmem %s2397_s19, 256  ;;  %p2399_p10 = scmp.lt.s32.totalorder %s490_s20, %s2397_s19 }
  0x56   : > { %p2394_p13 = pnand %p2392_p7, %p2352_p0  ;;  %p2400_p1 = scmp.lt.s32.totalorder %s2398_s9, %s2391_s2 }
  0x58   : > { %p2395_p5 = pneg %p2394_p13  ;;  %p2401_p2 = por %p2400_p1, %p2399_p10 }
  0x5a   : > { %p2402_p6 = pnand %p2401_p2, %p2395_p5 }
  0x5c   : > { %2405 = shalt.err (!%p2402_p6)
}
  0x5d   : > { %2197 = dma.hbm_to_vmem [thread:$0]  (!%p2709_p11), %s2716_s25, 128, %s490_s20, %s479_s17  }
  0x5e   : > { %498 = sbr.rel (%p2652_p8) target bundleno = 2217 (0x8a9), region = 76  ;;  %s2735_s6 = sand.u32 (!%p2652_p8), 1, %s2484_s22  }
  0x5f   : > { %s2738_s13 = sshll.u32 (!%p2652_p8), %s2735_s6, 3  ;;  %s501_s2 = scalar_lea.sflag (!%p2652_p8), [#allocation9], %s2735_s6 }
  0x60   : > { %s504_s29 = scalar_lea.vmem (!%p2652_p8), [#allocation8], %s2738_s13 }
  0x63   : > { %2459 = dma.done.wait (%p2642_p4), %s501_s2, 128  }
  0x64   : > { %2461 = vsyncadd (%p2642_p4), %s501_s2, 4294967168  ;;  %s509_s12 = sand.u32 1, %s2633_s26   ;;  %s513_s30 = scalar_lea.vmem [#allocation11], %s2738_s13 }
  0x65   : > { %s510_s25 = scalar_lea.sflag [#allocation12], %s509_s12 }
  0x66   : > { %2463 = dma.done.wait (%p2642_p4), %s510_s25, 128  }
  0x67   : > { %2465 = vsyncadd (%p2642_p4), %s510_s25, 4294967168  ;;  %p3038_p8 = scmp.eq.s32.totalorder %s2633_s26, 0 }
  0x69   : > { %2467 = dma.done.wait (%p3038_p8), [#allocation12], 512   ;;  %p3039_p11 = pmov %p3038_p8 }
  0x6a   : > { %p3040_p0 = pmov %p3038_p8 }
  0x6b   : > { %2469 = vsyncadd (%p3039_p11), [#allocation12], 4294966784 }
  0x6c   : > { %2471 = dma.done.wait (%p3040_p0), [#allocation15], 512   ;;  %p3041_p12 = pmov %p3040_p0 }
  0x6d   : > { %v2509_v0 = vmov 0.0   ;;  %vm2510_vm0 = vmmov 0   ;;  %v576_v1 = vld [vmem:[%s2996_s3 + $0x18] sm:$0xff]  ;;  %v575_v2 = vld [vmem:[%s2996_s3 + $0x10] sm:$0xff]  ;;  %v574_v3 = vld [vmem:[%s2996_s3 + $0x8] sm:$0xff]  ;;  %vm577_vm1 = vcmask 261120   ;;  %v807_v30 = vlaneseq }
  0x6e   : > { %2473 = vsyncadd (%p3041_p12), [#allocation15], 4294966784  ;;  %2056 = vmatprep.subr.mxu1 %v2509_v0  ;;  %2064 = vmatprep.mubr.msk.f32.mxu1 %vm2510_vm0, %v2509_v0  ;;  %v573_v4 = vld [vmem:[%s2996_s3] sm:$0xff]  ;;  %v656_v6 = vld [vmem:[%s2997_s4 + $0x18] sm:$0xff]  ;;  %vm815_vm2 = vcmask 64512   ;;  %s2511_s1 = smov 112  }
  0x6f   : > { %2078 = vmatprep.subr.mxu0 %v2509_v0  ;;  %2086 = vmatprep.mubr.msk.f32.mxu0 %vm2510_vm0, %v2509_v0  ;;  %v2780_v5 = vld [vmem:[%s504_s29] sm:$0xff]  ;;  %v655_v7 = vld [vmem:[%s2997_s4 + $0x10] sm:$0xff]  ;;  %v734_v11 = vld [vmem:[%s2998_s5 + $0x18] sm:$0xff]  ;;  %s2512_s19 = smov 120   ;;  %s2513_s9 = smov 104   ;;  %v808_v31 = vand.u32 127, %v807_v30 }
  0x70   : > { %2057 = vmatpush3.msra.mxu1 %v576_v1  ;;  %v654_v8 = vld [vmem:[%s2997_s4 + $0x8] sm:$0xff]  ;;  %v653_v9 = vld [vmem:[%s2997_s4] sm:$0xff]  ;;  %v572_v10 = vld [vmem:[%s513_s30] sm:$0xff]  ;;  %2079 = vmatpush3.msra.mxu0 %v734_v11  ;;  %s806_s2 = sld [smem:[#allocation7 + %s2492_s24]]  ;;  %v2514_v34 = vmov -1000000.0  }
  0x71   : > { %2058 = vmatprep.subr.mxu1 %v2509_v0  ;;  %v733_v12 = vld [vmem:[%s2998_s5 + $0x10] sm:$0xff]  ;;  %2080 = vmatprep.subr.mxu0 %v2509_v0  ;;  %v732_v13 = vld [vmem:[%s2998_s5 + $0x8] sm:$0xff]  ;;  %v731_v14 = vld [vmem:[%s2998_s5] sm:$0xff]  ;;  %s2515_s29 = smov 8   ;;  %s2516_s12 = smov 16   ;;  %vm1152_vm4 = vcmask 130112  }
  0x72   : > { %2059 = vmatpush3.msra.mxu1 %v575_v2  ;;  %2081 = vmatpush3.msra.mxu0 %v733_v12  ;;  %s2517_s25 = smov 24   ;;  %vm1329_vm5 = vcmask 195712   ;;  %vm1506_vm6 = vcmask 261312   ;;  %vm1718_vm7 = vcmask 523264   ;;  %s3042_s17 = sld [smem:[#allocation31_spill]] }
  0x73   : > { %2060 = vmatprep.subr.mxu1 %v2509_v0  ;;  %2082 = vmatprep.subr.mxu0 %v2509_v0  ;;  %s570_s28 = scalar_lea.vmem [#allocation16], %s2738_s13  ;;  %s3045_s26 = sld [smem:[#allocation34_spill]] }
  0x74   : > { %2061 = vmatpush3.msra.mxu1 %v574_v3  ;;  %2083 = vmatpush3.msra.mxu0 %v732_v13  ;;  %s1840_s21 = sshll.u32 %s570_s28, 4  ;;  %s1826_s18 = scalar_lea.sflag [#allocation10], %s2735_s6  ;;  %s1841_s21 = int_to_ptr.vmem [resolvable:$true] %s1840_s21 }
  0x75   : > { %2062 = vmatprep.subr.mxu1 %v2509_v0  ;;  %2084 = vmatprep.subr.mxu0 %v2509_v0  ;;  %s2406_s20 = scalar_lea.vmem %s1841_s21, 128 }
  0x76   : > { %2063 = vmatpush3.msra.mxu1 %v573_v4  ;;  %2085 = vmatpush3.msra.mxu0 %v731_v14  ;;  %v809_v32 = vstv %s806_s2  ;;  %p2407_p4 = scmp.ne.s32.totalorder %s1841_s21, %s2406_s20 }
  0x77   : > { %2065 = vmatmul.mubr.msk.f32.vlgmr.msra.gmra.mxu1 %vm577_vm1, %v2780_v5  ;;  %2067 = vmatprep.subr.mxu1 %v2509_v0  ;;  %vm810_vm3 = vcmp.lt.s32.totalorder %v808_v31, %v809_v32  ;;  %v1509_v31 = vld [vmem:[#allocation13] sm:$0xff] }
  0x78   : > { %2068 = vmatpush3.msra.mxu1 %v656_v6  ;;  %2075 = vmatprep.mubr.msk.f32.mxu1 %vm2510_vm0, %v2509_v0  ;;  %v811_v35 = vsel %vm810_vm3, 0.0, %v2514_v34  ;;  %p2408_p3 = pnand %p2407_p4, %p2693_p9 }
  0x79   : > { %2069 = vmatprep.subr.mxu1 %v2509_v0  ;;  %2087 = vmatmul.mubr.msk.f32.vlgmr.msra.gmra.mxu0 %vm577_vm1, %v572_v10 }
  0x7a   : > { %2070 = vmatpush3.msra.mxu1 %v655_v7  ;;  %2099 = vmatprep.subr.mxu0 %v2509_v0  ;;  %p2409_p7 = pneg %p2408_p3 }
  0x7b   : > { %2071 = vmatprep.subr.mxu1 %v2509_v0  ;;  %2101 = vmatprep.mubr.msk.f32.mxu0 %vm2510_vm0, %v2509_v0 }
  0x7c   : > { %2072 = vmatpush3.msra.mxu1 %v654_v8 }
  0x7d   : > { %2073 = vmatprep.subr.mxu1 %v2509_v0 }
  0x7e   : > { %2074 = vmatpush3.msra.mxu1 %v653_v9 }
  0x7f   : > { %2076 = vmatmul.mubr.msk.f32.vlgmr.msra.gmra.mxu1 %vm577_vm1, %v572_v10  ;;  %2089 = vmatprep.subr.mxu1 %v2509_v0 }
  0x80   : > { %2091 = vmatprep.mubr.msk.f32.mxu1 %vm2510_vm0, %v2509_v0 }
 0x137   : > { %v647_v15 = vpop.f32.mrf.mxu1 }
 0x138   : > { %v651_v16 = vmul.f32 0.35355338, %v647_v15 }
 0x139   : > { %v2066_v17 = vpop.f32.mrf.mxu1  ;;  %v801_v22 = vpop.f32.mrf.mxu0 }
 0x13a   : > { %652 = vst.msk [vmem:[#allocation2] sm:$0xff] %vm577_vm1, %v651_v16  ;;  %805 = vst.msk [vmem:[#allocation4] sm:$0xff] %vm577_vm1, %v801_v22 }
 0x13b   : > { %v2088_v23 = vpop.f32.mrf.mxu0 }
 0x13f   : > { %v726_v18 = vpop.f32.mrf.mxu1 }
 0x140   : > { %730 = vst.msk [vmem:[#allocation3] sm:$0xff] %vm577_vm1, %v726_v18 }
 0x141   : > { %v2077_v19 = vpop.f32.mrf.mxu1  ;;  %v812_v21 = vld [vmem:[#allocation2] sm:$0xff]  ;;  %v814_v33 = vld [vmem:[#allocation4] sm:$0xff] }
 0x147   : > { %v1155_v20 = vld [vmem:[#allocation3] sm:$0xff] }
 0x148   : > { %1161 = vrot.lane.b32.xlu1 %v1155_v20, %s2511_s1  ;;  %984 = vrot.lane.b32.xlu0 %v1155_v20, %s2512_s19 }
 0x149   : > { %2090 = vmatpush3.xpose.msk.msra.mxu1 %vm815_vm2, %v1155_v20 }
 0x14a   : > { %2094 = vmatprep.subr.mxu1 %v2509_v0 }
 0x14c   : > { %2092 = vmatmul.mubr.msk.f32.vlgmr.msra.gmra.mxu1 %vm815_vm2, %v812_v21  ;;  %1158 = vrot.lane.b32.xlu1 %v812_v21, %s2511_s1 }
 0x14d   : > { %981 = vrot.lane.b32.xlu0 %v812_v21, %s2512_s19  ;;  %2096 = vmatprep.mubr.msk.f32.mxu1 %vm2510_vm0, %v2509_v0 }
 0x14e   : > { %2095 = vmatpush3.msra.mxu1 %v814_v33 }
 0x14f   : > { %2104 = vmatprep.subr.mxu1 %v2509_v0 }
 0x150   : > { %1335 = vrot.lane.b32.xlu1 %v812_v21, %s2513_s9 }
 0x151   : > { %1338 = vrot.lane.b32.xlu0 %v1155_v20, %s2513_s9 }
 0x1ba   : > { %v985_v24 = vpop.permute.xlu0 %984  ;;  %v1162_v25 = vpop.permute.xlu1 %1161 }
 0x1bb   : > { %2100 = vmatpush3.xpose.msk.msra.mxu0 %vm815_vm2, %v985_v24 }
 0x1bc   : > { %2109 = vmatprep.subr.mxu0 %v2509_v0 }
 0x1be   : > { %v1159_v27 = vpop.permute.xlu1 %1158 }
 0x1bf   : > { %v982_v26 = vpop.permute.xlu0 %981 }
 0x1c0   : > { %2102 = vmatmul.mubr.msk.f32.vlgmr.msra.gmra.mxu0 %vm815_vm2, %v982_v26 }
 0x1c1   : > { %2110 = vmatpush3.xpose.msk.msra.mxu0 %vm815_vm2, %v1162_v25  ;;  %2111 = vmatprep.mubr.msk.f32.mxu0 %vm2510_vm0, %v2509_v0 }
 0x1c2   : > { %2119 = vmatprep.subr.mxu0 %v2509_v0  ;;  %v1336_v29 = vpop.permute.xlu1 %1335 }
 0x1c3   : > { %v1339_v28 = vpop.permute.xlu0 %1338 }
 0x1c4   : > { %2112 = vmatmul.mubr.msk.f32.vlgmr.msra.gmra.mxu0 %vm815_vm2, %v1159_v27  ;;  %v1512_v27 = vld [vmem:[#allocation13 + $0x18] sm:$0xff] }
 0x1c5   : > { %2120 = vmatpush3.xpose.msk.msra.mxu0 %vm815_vm2, %v1339_v28  ;;  %2121 = vmatprep.mubr.msk.f32.mxu0 %vm2510_vm0, %v2509_v0  ;;  %v1511_v28 = vld [vmem:[#allocation13 + $0x10] sm:$0xff] }
 0x1c6   : > { %2129 = vmatprep.subr.mxu0 %v2509_v0 }
 0x1c8   : > { %2122 = vmatmul.mubr.msk.f32.vlgmr.msra.gmra.mxu0 %vm815_vm2, %v1336_v29  ;;  %v1510_v29 = vld [vmem:[#allocation13 + $0x8] sm:$0xff] }
 0x1c9   : > { %2137 = vmatprep.mubr.msk.f32.mxu0 %vm2510_vm0, %v2509_v0  ;;  %2130 = vmatpush3.msra.mxu0 %v1512_v27 }
 0x1ca   : > { %2131 = vmatprep.subr.mxu0 %v2509_v0 }
 0x1cb   : > { %2132 = vmatpush3.msra.mxu0 %v1511_v28 }
 0x1cc   : > { %2133 = vmatprep.subr.mxu0 %v2509_v0 }
 0x1cd   : > { %2134 = vmatpush3.msra.mxu0 %v1510_v29 }
 0x1ce   : > { %2135 = vmatprep.subr.mxu0 %v2509_v0 }
 0x1cf   : > { %2136 = vmatpush3.msra.mxu0 %v1509_v31 }
 0x1d0   : > { %2151 = vmatprep.subr.mxu0 %v2509_v0 }
 0x20c   : > { %v888_v36 = vpop.f32.mrf.mxu1 }
 0x20d   : > { %v889_v37 = vadd.f32 %v888_v36, %v811_v35 }
 0x20e   : > { %v2093_v38 = vpop.f32.mrf.mxu1 }
 0x20f   : > { %v892_v39 = vsel %vm815_vm2, %v889_v37, -inf }
 0x210   : > { %893 = vmax.xlane.f32.xlu0 %v892_v39 }
 0x280   : > { %v1056_v40 = vpop.f32.mrf.mxu0 }
 0x281   : > { %v1057_v41 = vadd.f32 %v1056_v40, %v811_v35 }
 0x282   : > { %v2103_v42 = vpop.f32.mrf.mxu0 }
 0x283   : > { %v1060_v43 = vsel %vm815_vm2, %v1057_v41, -inf }
 0x284   : > { %1061 = vmax.xlane.f32.xlu1 %v1060_v43  ;;  %v1233_v44 = vpop.f32.mrf.mxu0 }
 0x285   : > { %v1234_v45 = vadd.f32 %v1233_v44, %v811_v35 }
 0x286   : > { %v2113_v46 = vpop.f32.mrf.mxu0 }
 0x287   : > { %v1237_v47 = vsel %vm815_vm2, %v1234_v45, -inf }
 0x288   : > { %v1410_v48 = vpop.f32.mrf.mxu0  ;;  %1238 = vmax.xlane.f32.xlu0 %v1237_v47  ;;  %v1621_v47 = vld [vmem:[#allocation14 + $0x18] sm:$0xff] }
 0x289   : > { %v1411_v49 = vadd.f32 %v1410_v48, %v811_v35  ;;  %v1620_v48 = vld [vmem:[#allocation14 + $0x10] sm:$0xff] }
 0x28a   : > { %v2123_v50 = vpop.f32.mrf.mxu0 }
 0x28b   : > { %v1414_v51 = vsel %vm815_vm2, %v1411_v49, -inf  ;;  %v1618_v50 = vld [vmem:[#allocation14] sm:$0xff] }
 0x28c   : > { %1415 = vmax.xlane.f32.xlu0 %v1414_v51  ;;  %v1709_v51 = vld [vmem:[%s3004_s11 + $0x30] sm:$0xff] }
 0x295   : > { %1072 = vrot.lane.b32.xlu1 %v814_v33, %s2512_s19 }
 0x299   : > { %v894_v52 = vpop.xlane.xlu0 %893 }
 0x29a   : > { %v895_v53 = vsub.f32 %v889_v37, %v894_v52  ;;  %v1708_v52 = vld [vmem:[%s3004_s11 + $0x28] sm:$0xff] }
 0x29c   : > { %v896_v54 = vmul.f32 1.442695, %v895_v53  ;;  %v1707_v53 = vld [vmem:[%s3004_s11 + $0x20] sm:$0xff] }
 0x29e   : > { %2270 = vpow2.f32 %v896_v54  ;;  %v1706_v54 = vld [vmem:[%s3004_s11 + $0x18] sm:$0xff] }
 0x2ab   : > { %v2271_v55 = vpop.eup %2270 }
 0x2ac   : > { %v898_v56 = vsel %vm815_vm2, %v2271_v55, 0.0 }
 0x2b9   : > { %899 = vadd.xlane.f32.xlu1 %v898_v56 }
 0x30d   : > { %v1062_v57 = vpop.xlane.xlu1 %1061 }
 0x30e   : > { %v1063_v58 = vsub.f32 %v1057_v41, %v1062_v57 }
 0x310   : > { %v1064_v59 = vmul.f32 1.442695, %v1063_v58 }
 0x311   : > { %v1239_v60 = vpop.xlane.xlu0 %1238  ;;  %v1073_v10 = vpop.permute.xlu1 %1072 }
 0x312   : > { %2272 = vpow2.f32 %v1064_v59  ;;  %v1240_v61 = vsub.f32 %v1234_v45, %v1239_v60 }
 0x314   : > { %v1241_v62 = vmul.f32 1.442695, %v1240_v61 }
 0x315   : > { %v1416_v63 = vpop.xlane.xlu0 %1415 }
 0x316   : > { %2274 = vpow2.f32 %v1241_v62  ;;  %v1417_v1 = vsub.f32 %v1411_v49, %v1416_v63  ;;  %v1619_v49 = vld [vmem:[#allocation14 + $0x8] sm:$0xff] }
 0x318   : > { %v1418_v2 = vmul.f32 1.442695, %v1417_v1  ;;  %v1994_v1 = vld [vmem:[%s3000_s7] ss:$0 sm:$0xff] }
 0x31a   : > { %2276 = vpow2.f32 %v1418_v2 }
 0x31f   : > { %v2273_v3 = vpop.eup %2272 }
 0x320   : > { %v1066_v4 = vsel %vm815_vm2, %v2273_v3, 0.0 }
 0x321   : > { %1067 = vadd.xlane.f32.xlu0 %v1066_v4 }
 0x323   : > { %v2275_v6 = vpop.eup %2274 }
 0x324   : > { %v1243_v7 = vsel %vm815_vm2, %v2275_v6, 0.0 }
 0x325   : > { %1244 = vadd.xlane.f32.xlu1 %v1243_v7  ;;  %v1705_v7 = vld [vmem:[%s3004_s11 + $0x10] sm:$0xff] }
 0x327   : > { %v2277_v8 = vpop.eup %2276 }
 0x328   : > { %v1420_v9 = vsel %vm815_vm2, %v2277_v8, 0.0 }
 0x329   : > { %1421 = vadd.xlane.f32.xlu0 %v1420_v9  ;;  %v1703_v9 = vld [vmem:[%s3004_s11] sm:$0xff] }
 0x336   : > { %1426 = vrot.lane.b32.xlu1 %v814_v33, %s2513_s9  ;;  %s3043_s9 = sld [smem:[#allocation32_spill]] }
 0x33c   : > { %v2000_v31 = vld [vmem:[%s3043_s9] ss:$0 sm:$0xff] }
 0x33f   : > { %1249 = vrot.lane.b32.xlu0 %v814_v33, %s2511_s1 }
 0x342   : > { %v900_v11 = vpop.xlane.xlu1 %899 }
 0x343   : > { %2278 = vrcp.f32 %v900_v11 }
 0x350   : > { %v2279_v12 = vpop.eup %2278 }
 0x351   : > { %v902_v13 = vmul.f32 %v2279_v12, %v2271_v55 }
 0x353   : > { %2097 = vmatmul.mubr.msk.f32.vlgmr.msra.gmra.mxu1 %vm815_vm2, %v902_v13 }
 0x354   : > { %2105 = vmatpush3.msra.mxu1 %v1073_v10  ;;  %2106 = vmatprep.mubr.msk.f32.mxu1 %vm2510_vm0, %v2509_v0  ;;  %v1996_v10 = vld [vmem:[%s3003_s10] ss:$0 sm:$0xff] }
 0x355   : > { %2114 = vmatprep.subr.mxu1 %v2509_v0 }
 0x3aa   : > { %v1068_v14 = vpop.xlane.xlu0 %1067 }
 0x3ab   : > { %2280 = vrcp.f32 %v1068_v14 }
 0x3ae   : > { %v1245_v15 = vpop.xlane.xlu1 %1244 }
 0x3af   : > { %2282 = vrcp.f32 %v1245_v15  ;;  %v1998_v15 = vld [vmem:[%s3042_s17] ss:$0 sm:$0xff]  ;;  %s2518_s17 = smov [#allocation16]  }
 0x3b0   : > { %s2410_s1 = sshll.u32 %s2518_s17, 4  ;;  %s2411_s1 = int_to_ptr.vmem [resolvable:$false] %s2410_s1 }
 0x3b1   : > { %p2413_p13 = scmp.lt.s32.totalorder %s1841_s21, %s2411_s1 }
 0x3b2   : > { %v1422_v16 = vpop.xlane.xlu0 %1421  ;;  %v1427_v22 = vpop.permute.xlu1 %1426 }
 0x3b3   : > { %2284 = vrcp.f32 %v1422_v16 }
 0x3b6   : > { %v1250_v19 = vpop.permute.xlu0 %1249 }
 0x3b8   : > { %v2281_v17 = vpop.eup %2280 }
 0x3b9   : > { %v1070_v18 = vmul.f32 %v2281_v17, %v2273_v3  ;;  %v1995_v3 = vld [vmem:[%s3001_s8] ss:$0 sm:$0xff] }
 0x3bb   : > { %2107 = vmatmul.mubr.msk.f32.vlgmr.msra.gmra.mxu1 %vm815_vm2, %v1070_v18 }
 0x3bc   : > { %v2283_v20 = vpop.eup %2282  ;;  %2115 = vmatpush3.msra.mxu1 %v1250_v19  ;;  %2116 = vmatprep.mubr.msk.f32.mxu1 %vm2510_vm0, %v2509_v0 }
 0x3bd   : > { %2124 = vmatprep.subr.mxu1 %v2509_v0  ;;  %v1247_v21 = vmul.f32 %v2283_v20, %v2275_v6 }
 0x3bf   : > { %2117 = vmatmul.mubr.msk.f32.vlgmr.msra.gmra.mxu1 %vm815_vm2, %v1247_v21 }
 0x3c0   : > { %v2285_v23 = vpop.eup %2284  ;;  %2125 = vmatpush3.msra.mxu1 %v1427_v22  ;;  %2126 = vmatprep.mubr.msk.f32.mxu1 %vm2510_vm0, %v2509_v0 }
 0x3c1   : > { %v1424_v24 = vmul.f32 %v2285_v23, %v2277_v8  ;;  %2140 = vmatprep.subr.mxu1 %v2509_v0  ;;  %v1704_v8 = vld [vmem:[%s3004_s11 + $0x8] sm:$0xff] }
 0x3c3   : > { %2127 = vmatmul.mubr.msk.f32.vlgmr.msra.gmra.mxu1 %vm815_vm2, %v1424_v24 }
 0x3c4   : > { %2148 = vmatprep.mubr.msk.f32.mxu1 %vm2510_vm0, %v2509_v0  ;;  %2141 = vmatpush3.msra.mxu1 %v1621_v47 }
 0x3c5   : > { %2142 = vmatprep.subr.mxu1 %v2509_v0 }
 0x3c6   : > { %2143 = vmatpush3.msra.mxu1 %v1620_v48 }
 0x3c7   : > { %2144 = vmatprep.subr.mxu1 %v2509_v0 }
 0x3c8   : > { %2145 = vmatpush3.msra.mxu1 %v1619_v49 }
 0x3c9   : > { %2146 = vmatprep.subr.mxu1 %v2509_v0 }
 0x3ca   : > { %2147 = vmatpush3.msra.mxu1 %v1618_v50 }
 0x413   : > { %v972_v25 = vpop.f32.mrf.mxu1 }
 0x414   : > { %976 = vst.msk [vmem:[#allocation5] sm:$0xff] %vm815_vm2, %v972_v25 }
 0x415   : > { %v2098_v26 = vpop.f32.mrf.mxu1 }
 0x47b   : > { %v1144_v30 = vpop.f32.mrf.mxu1 }
 0x47c   : > { %1149 = vrot.lane.b32.xlu1 %v1144_v30, %s2515_s29 }
 0x47d   : > { %v2108_v32 = vpop.f32.mrf.mxu1 }
 0x47f   : > { %v1321_v33 = vpop.f32.mrf.mxu1 }
 0x480   : > { %1326 = vrot.lane.b32.xlu0 %v1321_v33, %s2516_s12  ;;  %s3044_s12 = sld [smem:[#allocation33_spill]] }
 0x481   : > { %v2118_v34 = vpop.f32.mrf.mxu1 }
 0x483   : > { %v1498_v35 = vpop.f32.mrf.mxu1 }
 0x484   : > { %1503 = vrot.lane.b32.xlu1 %v1498_v35, %s2517_s25  ;;  %s2003_s25 = sshll.u32 %s2492_s24, 7  ;;  %s2412_s24 = scalar_lea.vmem %s2411_s1, 256 }
 0x485   : > { %v2128_v36 = vpop.f32.mrf.mxu1  ;;  %s1838_s30 = scalar_lea.hbm %s3045_s26, %s2003_s25  ;;  %p2414_p5 = scmp.lt.s32.totalorder %s2412_s24, %s2406_s20 }
 0x486   : > { %v2001_v33 = vld [vmem:[%s3044_s12] ss:$0 sm:$0xff] }
 0x487   : > { %p2415_p10 = por %p2414_p5, %p2413_p13 }
 0x489   : > { %p2416_p1 = pnand %p2415_p10, %p2409_p7 }
 0x4ee   : > { %v1150_v37 = vpop.permute.xlu1 %1149 }
 0x4ef   : > { %1153 = vst.msk [vmem:[#allocation5] sm:$0xff] %vm1152_vm4, %v1150_v37 }
 0x4f2   : > { %v1327_v38 = vpop.permute.xlu0 %1326 }
 0x4f3   : > { %1330 = vst.msk [vmem:[#allocation5] sm:$0xff] %vm1329_vm5, %v1327_v38 }
 0x4f6   : > { %v1504_v39 = vpop.permute.xlu1 %1503 }
 0x4f7   : > { %1507 = vst.msk [vmem:[#allocation5] sm:$0xff] %vm1506_vm6, %v1504_v39 }
 0x4fe   : > { %v1508_v40 = vld [vmem:[#allocation5] sm:$0xff] }
 0x4ff   : > { %2138 = vmatmul.mubr.msk.f32.vlgmr.msra.gmra.mxu0 %vm577_vm1, %v1508_v40 }
 0x500   : > { %2167 = vmatprep.mubr.msk.f32.mxu0 %vm2510_vm0, %v2509_v0 }
 0x5bf   : > { %v1582_v41 = vpop.f32.mrf.mxu0 }
 0x5c0   : > { %v1583_v42 = vadd.f32 %v1582_v41, %v2780_v5  ;;  %v1710_v5 = vld [vmem:[%s3004_s11 + $0x38] sm:$0xff] }
 0x5c1   : > { %v2139_v43 = vpop.f32.mrf.mxu0  ;;  %2152 = vmatpush3.msra.mxu0 %v1710_v5 }
 0x5c2   : > { %v1586_v44 = vsel %vm577_vm1, %v1583_v42, 0.0  ;;  %v1591_v45 = vmul.f32 %v1583_v42, %v1583_v42  ;;  %2153 = vmatprep.subr.mxu0 %v2509_v0 }
 0x5c3   : > { %1587 = vadd.xlane.f32.xlu0 %v1586_v44  ;;  %2154 = vmatpush3.msra.mxu0 %v1709_v51 }
 0x5c4   : > { %v1592_v46 = vsel %vm577_vm1, %v1591_v45, 0.0  ;;  %2155 = vmatprep.subr.mxu0 %v2509_v0 }
 0x5c5   : > { %1593 = vadd.xlane.f32.xlu1 %v1592_v46  ;;  %2156 = vmatpush3.msra.mxu0 %v1708_v52 }
 0x5c6   : > { %2157 = vmatprep.subr.mxu0 %v2509_v0 }
 0x5c7   : > { %2158 = vmatpush3.msra.mxu0 %v1707_v53 }
 0x5c8   : > { %2159 = vmatprep.subr.mxu0 %v2509_v0 }
 0x5c9   : > { %2160 = vmatpush3.msra.mxu0 %v1706_v54 }
 0x5ca   : > { %2161 = vmatprep.subr.mxu0 %v2509_v0 }
 0x5cb   : > { %2162 = vmatpush3.msra.mxu0 %v1705_v7 }
 0x5cc   : > { %2163 = vmatprep.subr.mxu0 %v2509_v0 }
 0x5cd   : > { %2164 = vmatpush3.msra.mxu0 %v1704_v8 }
 0x5ce   : > { %2165 = vmatprep.subr.mxu0 %v2509_v0 }
 0x5cf   : > { %2166 = vmatpush3.msra.mxu0 %v1703_v9 }
 0x64c   : > { %v1588_v55 = vpop.xlane.xlu0 %1587 }
 0x64d   : > { %v1590_v56 = vmul.f32 0.03125, %v1588_v55 }
 0x64e   : > { %v1594_v57 = vpop.xlane.xlu1 %1593 }
 0x64f   : > { %v1596_v58 = vmul.f32 %v1590_v56, %v1590_v56  ;;  %v1595_v59 = vmul.f32 0.03125, %v1594_v57  ;;  %v1600_v62 = vsub.f32 %v1583_v42, %v1590_v56 }
 0x651   : > { %v1597_v60 = vsub.f32 %v1595_v59, %v1596_v58 }
 0x653   : > { %v1598_v61 = vadd.f32 1e-05, %v1597_v60 }
 0x655   : > { %2286 = vrsqrt.f32 %v1598_v61 }
 0x662   : > { %v2287_v63 = vpop.eup %2286 }
 0x663   : > { %v1601_v2 = vmul.f32 %v2287_v63, %v1600_v62 }
 0x665   : > { %v1609_v4 = vmul.f32 %v1994_v1, %v1601_v2 }
 0x667   : > { %v1617_v6 = vadd.f32 %v1995_v3, %v1609_v4 }
 0x669   : > { %2149 = vmatmul.mubr.msk.f32.vlgmr.msra.gmra.mxu1 %vm577_vm1, %v1617_v6 }
 0x729   : > { %v1698_v11 = vpop.f32.mrf.mxu1 }
 0x72a   : > { %v1699_v12 = vadd.f32 %v1996_v10, %v1698_v11 }
 0x72b   : > { %v2150_v13 = vpop.f32.mrf.mxu1 }
 0x72c   : > { %v1702_v14 = vmax.f32 %v1699_v12, 0.0 }
 0x72e   : > { %2168 = vmatmul.mubr.msk.f32.vlgmr.msra.gmra.mxu0 %vm1718_vm7, %v1702_v14 }
 0x7ee   : > { %v1788_v16 = vpop.f32.mrf.mxu0 }
 0x7ef   : > { %v1789_v17 = vadd.f32 %v1998_v15, %v1788_v16 }
 0x7f0   : > { %v2169_v18 = vpop.f32.mrf.mxu0 }
 0x7f1   : > { %v1792_v19 = vadd.f32 %v1789_v17, %v1617_v6 }
 0x7f3   : > { %v1793_v0 = vsel %vm577_vm1, %v1792_v19, 0.0  ;;  %v1797_v20 = vmul.f32 %v1792_v19, %v1792_v19 }
 0x7f4   : > { %1794 = vadd.xlane.f32.xlu0 %v1793_v0 }
 0x7f5   : > { %v1798_v21 = vsel %vm577_vm1, %v1797_v20, 0.0 }
 0x7f8   : > { %1799 = vadd.xlane.f32.xlu0 %v1798_v21 }
 0x87d   : > { %v1795_v22 = vpop.xlane.xlu0 %1794 }
 0x87e   : > { %v1796_v23 = vmul.f32 0.03125, %v1795_v22 }
 0x880   : > { %v1802_v25 = vmul.f32 %v1796_v23, %v1796_v23  ;;  %v1806_v29 = vsub.f32 %v1792_v19, %v1796_v23 }
 0x881   : > { %v1800_v24 = vpop.xlane.xlu0 %1799 }
 0x882   : > { %v1801_v26 = vmul.f32 0.03125, %v1800_v24 }
 0x884   : > { %v1803_v27 = vsub.f32 %v1801_v26, %v1802_v25 }
 0x886   : > { %v1804_v28 = vadd.f32 1e-05, %v1803_v27 }
 0x888   : > { %2288 = vrsqrt.f32 %v1804_v28 }
 0x895   : > { %v2289_v30 = vpop.eup %2288 }
 0x896   : > { %v1807_v32 = vmul.f32 %v2289_v30, %v1806_v29 }
 0x898   : > { %v1815_v34 = vmul.f32 %v2000_v31, %v1807_v32 }
 0x89a   : > { %v1823_v35 = vadd.f32 %v2001_v33, %v1815_v34 }
 0x89c   : > { %1824 = vst.msk [vmem:[%s570_s28] sm:$0xff] %vm577_vm1, %v1823_v35 }
 0x89d   : > { %2419 = shalt.err (!%p2416_p1)
}
 0x89e   : > { %s2420_s13 = scalar_lea.hbm %s1838_s30, 128  ;;  %s2424_s9 = scalar_lea.hbm %s3045_s26, 256 }
 0x89f   : > { %p2421_p2 = scmp.ne.s32.totalorder %s1838_s30, %s2420_s13  ;;  %p2425_p11 = scmp.lt.s32.totalorder %s1838_s30, %s3045_s26 }
 0x8a0   : > { %p2426_p0 = scmp.lt.s32.totalorder %s2424_s9, %s2420_s13 }
 0x8a1   : > { %p2422_p6 = pnand %p2421_p2, %p2693_p9 }
 0x8a2   : > { %p2427_p12 = por %p2426_p0, %p2425_p11 }
 0x8a3   : > { %p2423_p8 = pneg %p2422_p6 }
 0x8a5   : > { %p2428_p4 = pnand %p2427_p12, %p2423_p8 }
 0x8a7   : > { %2431 = shalt.err (!%p2428_p4)
}
 0x8a8   : > { %2182 = dma.vmem_to_hbm [thread:$0]  (%p2693_p9), %s1841_s21, 128, %s1838_s30, %s1826_s18  }
 0x8a9 PF: > { %s3046_s12 = sld [smem:[#allocation23_spill]]  ;;  %p3049_p7 = scmp.ge.s32.totalorder %s2500_s0, 2 }
 0x8aa   : > { %s3047_s25 = sld [smem:[#allocation25_spill]] }
 0x8af   : > { %s1852_s28 = sand.u32 1, %s3046_s12  }
 0x8b0   : > { %p3048_p3 = scmp.ne.s32.totalorder %s3047_s25, 0  ;;  %s1853_s27 = scalar_lea.sflag [#allocation10], %s1852_s28 }
 0x8b2   : > { %p2199_p13 = pnand %p3049_p7, %p3048_p3 }
 0x8b4   : > { %p2200_p5 = pneg %p2199_p13 }
 0x8b6   : > { %2475 = dma.done.wait (%p2200_p5), %s1853_s27, 128  }
 0x8b7   : > { %2477 = vsyncadd (%p2200_p5), %s1853_s27, 4294967168  ;;  %s39_s0 = sadd.s32 1, %s2500_s0   ;;  %s3050_s24 = sld [smem:[#allocation24_spill]] }
 0x8b8   : > { %p36_p10 = scmp.ge.s32.totalorder %s39_s0, 4   ;;  %s3051_s25 = sld [smem:[#allocation26_spill]] }
 0x8b9   : > { %s3052_s21 = smov %s2484_s22  ;;  %s3053_s22 = smov %s2488_s23 }
 0x8ba   : > { %s3054_s23 = smov %s2702_s16  ;;  %38 = sbr.rel (!%p36_p10) target bundleno = 22 (0x16), region = 142 }
 0x8bf   :  { %1858 = vsyncpa [#allocation9], 1 }
 0x8c0   :  { %1860 = vsyncpa [#allocation9 + $0x1], 1 }
 0x8c1   :  { %1861 = vsyncpa [#allocation12], 1 }
 0x8c2   :  { %1863 = vsyncpa [#allocation12 + $0x1], 1 }
 0x8c3   :  { %1864 = vsyncpa [#allocation15], 1 }
 0x8c4   :  { %1865 = vsyncpa [#allocation10], 1 }
 0x8c5   :  { %1867 = vsyncpa [#allocation10 + $0x1], 1 }

</bundles_post_ra>
